<compile_context>
chip_gen: v7x
topology: tpu7x:2x2x1
jax: 0.10.0
libtpu: 0.0.40
codegen_flags: <defaults>
</compile_context>

<pallas_src>
import functools

import jax
import jax.numpy as jnp
from jax.experimental import pallas as pl

# ---- model dims (small, consistent with a BERT-style forward) ----------------
VOCAB = 100
VOCAB_PAD = 128          # lane-pad the one-hot / embedding table
B, S, H = 2, 8, 32
N_HEADS, D_HEAD = 4, 8   # H = N_HEADS * D_HEAD
FFN = 64
FFN_PAD = 128            # lane-pad the FFN hidden dim (zero-padded, exact)
N_LAYERS = 2
LN_EPS = 1e-12


# ---- small math helpers (usable both inside kernels and in the reference) ----
def _gelu(x):
    # tanh approximation of GELU (f32 everywhere — v5e-safe)
    return 0.5 * x * (1.0 + jnp.tanh(0.7978845608028654 * (x + 0.044715 * x * x * x)))


def _layernorm(x, g, b):
    mu = jnp.mean(x, axis=-1, keepdims=True)
    var = jnp.mean((x - mu) ** 2, axis=-1, keepdims=True)
    return (x - mu) * jax.lax.rsqrt(var + LN_EPS) * g + b


# ---- Pallas kernel: fully fused BERT forward ----------------------------------
# Inputs (full-array VMEM blocks, no grid; nb = number of batch elements):
#   ids:(nb*S,1) i32   tok_emb:(VOCAB_PAD,H) f32   pos:(nb*S,H) f32   ln_emb g/b:(1,H)
#   per-layer stacks (leading N_LAYERS axis):
#     wqkv:(L,3*NH,H,DH) bf16   bqkv:(L,3*NH,1,DH) f32   (scale folded into q part)
#     wo:(L,NH,DH,H) bf16       bo:(L,1,H) f32           g1/b1:(L,1,H) f32
#     w1:(L,H,FFN_PAD) bf16     c1:(L,1,FFN_PAD) f32
#     w2:(L,FFN_PAD,H) bf16     c2:(L,1,H) f32           g2/b2:(L,1,H) f32
# Output: summary=None -> (nb*S,H);  'max'/'mean' -> (nb,H)
def fused_bert_kernel(ids_ref, tok_emb_ref, pos_ref, lng_ref, lnb_ref,
                      wqkv_ref, bqkv_ref, wo_ref, bo_ref,
                      g1_ref, b1_ref, w1_ref, c1_ref, w2_ref, c2_ref,
                      g2_ref, b2_ref, o_ref, *, nb, summary):
    n_tok = nb * S

    # --- embedding lookup as a one-hot matmul (kept f32 / exact) ---
    ids = ids_ref[...]                                              # (n_tok, 1) i32
    onehot = (ids == jax.lax.broadcasted_iota(jnp.int32, (n_tok, VOCAB_PAD), 1)
              ).astype(jnp.float32)                                 # (n_tok, 128)
    emb = jnp.dot(onehot, tok_emb_ref[...],
                  preferred_element_type=jnp.float32) + pos_ref[...]
    h = _layernorm(emb, lng_ref[...], lnb_ref[...])                 # (n_tok, H) f32

    # --- encoder layers (static unroll over layers) ---
    for l in range(N_LAYERS):
        hb = h.astype(jnp.bfloat16)

        # head-batched QKV projection: one rank-3 batched dot over 3*N_HEADS heads.
        xb = jnp.broadcast_to(hb[None], (3 * N_HEADS, n_tok, H))
        qkv = jnp.einsum('gth,ghd->gtd', xb, wqkv_ref[l],
                         preferred_element_type=jnp.float32) + bqkv_ref[l]
        # split along the MAJOR (head) axis — no lane slicing, no relayout
        q = qkv[0:N_HEADS].reshape(N_HEADS * nb, S, D_HEAD).astype(jnp.bfloat16)
        k = qkv[N_HEADS:2 * N_HEADS].reshape(N_HEADS * nb, S, D_HEAD).astype(jnp.bfloat16)
        v = qkv[2 * N_HEADS:3 * N_HEADS].reshape(N_HEADS * nb, S, D_HEAD).astype(jnp.bfloat16)

        # batched attention over G = N_HEADS*nb independent (S, D_HEAD) problems
        scores = jnp.einsum('gqd,gkd->gqk', q, k,
                            preferred_element_type=jnp.float32)     # (G, S, S) f32
        scores = scores - jnp.max(scores, axis=-1, keepdims=True)
        p = jnp.exp(scores)
        p = p * pl.reciprocal(jnp.sum(p, axis=-1, keepdims=True), approx=True)
        ctx = jnp.einsum('gqk,gkd->gqd', p.astype(jnp.bfloat16), v,
                         preferred_element_type=jnp.float32)        # (G, S, DH)
        ctx = ctx.reshape(N_HEADS, n_tok, D_HEAD).astype(jnp.bfloat16)

        # output projection: head-batched dot then head-sum (transpose-free)
        attn_ph = jnp.einsum('gtd,gdh->gth', ctx, wo_ref[l],
                             preferred_element_type=jnp.float32)    # (NH, n_tok, H)
        attn = jnp.sum(attn_ph, axis=0) + bo_ref[l]                 # (n_tok, H)
        h1 = _layernorm(h + attn, g1_ref[l], b1_ref[l])

        # FFN (lane-padded to 128; padding columns/rows are exact zeros)
        z = jnp.dot(h1.astype(jnp.bfloat16), w1_ref[l],
                    preferred_element_type=jnp.float32) + c1_ref[l]
        ff = jnp.dot(_gelu(z).astype(jnp.bfloat16), w2_ref[l],
                     preferred_element_type=jnp.float32) + c2_ref[l]
        h = _layernorm(h1 + ff, g2_ref[l], b2_ref[l])

    # --- fused sequence summary ---
    if summary is None:
        o_ref[...] = h                                              # (n_tok, H)
    else:
        h3 = h.reshape(nb, S, H)
        if summary == "max":
            o_ref[...] = jnp.max(h3, axis=1)                        # (nb, H)
        else:
            o_ref[...] = jnp.mean(h3, axis=1)                       # (nb, H)


PARAM_ORDER = ("tok_emb", "pos_tiled", "ln_emb_g", "ln_emb_b",
               "wqkv", "bqkv", "wo", "bo", "g1", "b1",
               "w1", "c1", "w2", "c2", "g2", "b2")


def fused_forward(token_ids, packed, summary):
    nb = token_ids.shape[0]
    n_tok = nb * S
    ids2d = token_ids.reshape(n_tok, 1).astype(jnp.int32)
    pos = jnp.tile(packed["pos"], (nb, 1))                           # (n_tok, H)
    out_shape = (jax.ShapeDtypeStruct((n_tok, H), jnp.float32) if summary is None
                 else jax.ShapeDtypeStruct((nb, H), jnp.float32))
    fn = pl.pallas_call(
        functools.partial(fused_bert_kernel, nb=nb, summary=summary),
        out_shape=out_shape,   # no grid: single step, full-array VMEM blocks
    )
    args = {**packed, "pos_tiled": pos}
    return fn(ids2d, *[args[k] for k in PARAM_ORDER])


# ---- parameter packing: per-head QKV stacks, fold scale, pad lanes, bf16 -----
def pack_params(params):
    scale = 1.0 / (D_HEAD ** 0.5)

    def heads_w(w):   # (H, H), columns head-major -> (N_HEADS, H, D_HEAD)
        return jnp.transpose(w.reshape(H, N_HEADS, D_HEAD), (1, 0, 2))

    def heads_b(b):   # (1, H) -> (N_HEADS, 1, D_HEAD)
        return jnp.transpose(b.reshape(1, N_HEADS, D_HEAD), (1, 0, 2))

    acc = {k: [] for k in ("wqkv", "bqkv", "wo", "bo", "g1", "b1",
                           "w1", "c1", "w2", "c2", "g2", "b2")}
    for (Wq, Bq, Wk, Bk, Wv, Bv, Wo, Bo, G1, B1,
         W1, C1, W2, C2, G2, B2) in params["layers"]:
        acc["wqkv"].append(jnp.concatenate(
            [heads_w(Wq * scale), heads_w(Wk), heads_w(Wv)], axis=0
        ).astype(jnp.bfloat16))                                       # (3*NH, H, DH)
        acc["bqkv"].append(jnp.concatenate(
            [heads_b(Bq * scale), heads_b(Bk), heads_b(Bv)], axis=0)) # (3*NH, 1, DH)
        acc["wo"].append(Wo.reshape(N_HEADS, D_HEAD, H).astype(jnp.bfloat16))
        acc["bo"].append(Bo)
        acc["g1"].append(G1); acc["b1"].append(B1)
        acc["w1"].append(jnp.pad(W1, ((0, 0), (0, FFN_PAD - FFN))).astype(jnp.bfloat16))
        acc["c1"].append(jnp.pad(C1, ((0, 0), (0, FFN_PAD - FFN))))
        acc["w2"].append(jnp.pad(W2, ((0, FFN_PAD - FFN), (0, 0))).astype(jnp.bfloat16))
        acc["c2"].append(C2)
        acc["g2"].append(G2); acc["b2"].append(B2)
    packed = {k: jnp.stack(vs, axis=0) for k, vs in acc.items()}
    packed["tok_emb"] = jnp.pad(params["tok_emb"], ((0, VOCAB_PAD - VOCAB), (0, 0)))
    packed["pos"] = params["pos_emb"]                                 # (S, H)
    packed["ln_emb_g"] = params["ln_emb_g"]
    packed["ln_emb_b"] = params["ln_emb_b"]
    return packed


class BERTInferencePallas:
    """Mirror of the PyTorch BERTInference forward semantics (single fused kernel)."""

    def __init__(self, params, sequence_summary_type="last"):
        self.packed = pack_params(params)
        self.sequence_summary_type = sequence_summary_type

    def __call__(self, x):
        t = self.sequence_summary_type
        nb = x.shape[0]
        if t == "first":
            # PyTorch: outputs[:0, :] — an empty (0,S,H) tensor. Skip the kernel.
            return jnp.zeros((0, S, H), jnp.float32)
        elif t == "last":
            # PyTorch: outputs[:-1, :] drops the last BATCH element (mirrors the
            # original, likely-buggy, batch-dim slice). Only compute the survivors.
            if nb <= 1:
                return jnp.zeros((0, S, H), jnp.float32)
            return fused_forward(x[:-1], self.packed, None).reshape(nb - 1, S, H)
        elif t == "max_pooling":
            return fused_forward(x, self.packed, "max")
        elif t == "mean_pooling":
            return fused_forward(x, self.packed, "mean")
        else:
            raise NotImplementedError(
                "sequence_summary_type = [first, last, max_pooling, mean_pooling]")


# ---- deterministic parameter init --------------------------------------------
def init_params(key):
    def nrm(k, shape, scale=0.02):
        return scale * jax.random.normal(k, shape, dtype=jnp.float32)

    keys = jax.random.split(key, 2 + N_LAYERS)
    params = {
        "tok_emb": nrm(keys[0], (VOCAB, H)),
        "pos_emb": nrm(keys[1], (S, H)),
        "ln_emb_g": jnp.ones((1, H), jnp.float32),
        "ln_emb_b": jnp.zeros((1, H), jnp.float32),
        "layers": [],
    }
    for l in range(N_LAYERS):
        lk = jax.random.split(keys[2 + l], 6)
        layer = (
            nrm(lk[0], (H, H)), jnp.zeros((1, H), jnp.float32),   # wq, bq
            nrm(lk[1], (H, H)), jnp.zeros((1, H), jnp.float32),   # wk, bk
            nrm(lk[2], (H, H)), jnp.zeros((1, H), jnp.float32),   # wv, bv
            nrm(lk[3], (H, H)), jnp.zeros((1, H), jnp.float32),   # wo, bo
            jnp.ones((1, H), jnp.float32), jnp.zeros((1, H), jnp.float32),  # ln1 g/b
            nrm(lk[4], (H, FFN)), jnp.zeros((1, FFN), jnp.float32),         # w1, c1
            nrm(lk[5], (FFN, H)), jnp.zeros((1, H), jnp.float32),           # w2, c2
            jnp.ones((1, H), jnp.float32), jnp.zeros((1, H), jnp.float32),  # ln2 g/b
        )
        params["layers"].append(layer)
    return params


# ---- pure-JAX f32 reference for correctness check -----------------------------
def ref_encoder_layer(x, p):
    wq, bq, wk, bk, wv, bv, wo, bo, g1, b1, w1, c1, w2, c2, g2, b2 = p
    q = x @ wq + bq
    k = x @ wk + bk
    v = x @ wv + bv
    qh = q.reshape(x.shape[0], S, N_HEADS, D_HEAD)
    kh = k.reshape(x.shape[0], S, N_HEADS, D_HEAD)
    vh = v.reshape(x.shape[0], S, N_HEADS, D_HEAD)
    scores = jnp.einsum("bqhd,bkhd->bhqk", qh, kh) / (D_HEAD ** 0.5)
    pr = jax.nn.softmax(scores, axis=-1)
    ctx = jnp.einsum("bhqk,bkhd->bqhd", pr, vh).reshape(x.shape[0], S, H)
    attn = ctx @ wo + bo
    h1 = _layernorm(x + attn, g1, b1)
    ff = _gelu(h1 @ w1 + c1) @ w2 + c2
    return _layernorm(h1 + ff, g2, b2)


def ref_transformer(token_ids, params):
    emb = jnp.take(params["tok_emb"], token_ids, axis=0) + params["pos_emb"][None]
    h = _layernorm(emb, params["ln_emb_g"], params["ln_emb_b"])
    for lp in params["layers"]:
        h = ref_encoder_layer(h, lp)
    return h


if __name__ == "__main__":
    key = jax.random.PRNGKey(0)
    k_x, k_p = jax.random.split(key)
    x = jax.random.randint(k_x, (B, S), 0, VOCAB, dtype=jnp.int32)
    params = init_params(k_p)

    # default summary: 'last'  -> outputs[:-1, :]
    model_last = BERTInferencePallas(params, sequence_summary_type="last")
    out_last = jax.block_until_ready(model_last(x))

    # fused pooling paths
    out_max = jax.block_until_ready(
        BERTInferencePallas(params, sequence_summary_type="max_pooling")(x))
    out_mean = jax.block_until_ready(
        BERTInferencePallas(params, sequence_summary_type="mean_pooling")(x))

    # 'first' short-circuits to an empty tensor (mirrors PyTorch outputs[:0,:])
    out_first = BERTInferencePallas(params, sequence_summary_type="first")(x)
    assert out_first.shape == (0, S, H)

    # correctness vs pure-JAX f32 reference.
    # Tolerance loosened to 2e-2: matmul operands are bf16 on the MXU (f32 accum)
    # and the softmax denominator uses the approximate EUP reciprocal.
    ref_outputs = ref_transformer(x, params)
    assert out_last.shape == (B - 1, S, H)
    assert jnp.allclose(out_last, ref_outputs[:-1, :], atol=2e-2, rtol=2e-2)
    assert out_max.shape == (B, H)
    assert jnp.allclose(out_max, jnp.max(ref_outputs, axis=1), atol=2e-2, rtol=2e-2)
    assert out_mean.shape == (B, H)
    assert jnp.allclose(out_mean, jnp.mean(ref_outputs, axis=1), atol=2e-2, rtol=2e-2)

    print("KERNEL_OK")
</pallas_src>

<mosaic_0001>
module attributes {stable_mosaic.version = 11 : i64} {
  func.func @fused_bert_kernel(%arg0: memref<8x1xi32, #tpu.memory_space<vmem>>, %arg1: memref<128x32xf32, #tpu.memory_space<vmem>>, %arg2: memref<8x32xf32, #tpu.memory_space<vmem>>, %arg3: memref<1x32xf32, #tpu.memory_space<vmem>>, %arg4: memref<1x32xf32, #tpu.memory_space<vmem>>, %arg5: memref<2x12x32x8xbf16, #tpu.memory_space<vmem>>, %arg6: memref<2x12x1x8xf32, #tpu.memory_space<vmem>>, %arg7: memref<2x4x8x32xbf16, #tpu.memory_space<vmem>>, %arg8: memref<2x1x32xf32, #tpu.memory_space<vmem>>, %arg9: memref<2x1x32xf32, #tpu.memory_space<vmem>>, %arg10: memref<2x1x32xf32, #tpu.memory_space<vmem>>, %arg11: memref<2x32x128xbf16, #tpu.memory_space<vmem>>, %arg12: memref<2x1x128xf32, #tpu.memory_space<vmem>>, %arg13: memref<2x128x32xbf16, #tpu.memory_space<vmem>>, %arg14: memref<2x1x32xf32, #tpu.memory_space<vmem>>, %arg15: memref<2x1x32xf32, #tpu.memory_space<vmem>>, %arg16: memref<2x1x32xf32, #tpu.memory_space<vmem>>, %arg17: memref<8x32xf32, #tpu.memory_space<vmem>>) attributes {dimension_semantics = [], scalar_prefetch = 0 : i64, scratch_operands = 0 : i64, tpu.core_type = #tpu.core_type<tc>} {
    %c0 = arith.constant 0 : index
    %c0_0 = arith.constant 0 : index
    %0 = vector.load %arg0[%c0, %c0_0] : memref<8x1xi32, #tpu.memory_space<vmem>>, vector<8x1xi32>
    %1 = tpu.iota {dimensions = array<i32: 1>} : vector<8x128xi32>
    %2 = vector.broadcast %0 : vector<8x1xi32> to vector<8x128xi32>
    %3 = arith.cmpi eq, %2, %1 : vector<8x128xi32>
    %4 = arith.extui %3 : vector<8x128xi1> to vector<8x128xi32>
    %5 = arith.sitofp %4 : vector<8x128xi32> to vector<8x128xf32>
    %c0_1 = arith.constant 0 : index
    %c0_2 = arith.constant 0 : index
    %6 = vector.load %arg1[%c0_1, %c0_2] : memref<128x32xf32, #tpu.memory_space<vmem>>, vector<128x32xf32>
    %cst = arith.constant dense<0.000000e+00> : vector<8x32xf32>
    %7 = tpu.matmul %5, %6, %cst {dimension_numbers = #tpu.dot_dimension_numbers<[1], [0], [0], [1], [0, 0, 1, 1], [], []>} : vector<8x128xf32>, vector<128x32xf32>, vector<8x32xf32> -> vector<8x32xf32>
    %c0_3 = arith.constant 0 : index
    %c0_4 = arith.constant 0 : index
    %8 = vector.load %arg2[%c0_3, %c0_4] : memref<8x32xf32, #tpu.memory_space<vmem>>, vector<8x32xf32>
    %9 = arith.addf %7, %8 : vector<8x32xf32>
    %c0_5 = arith.constant 0 : index
    %c0_6 = arith.constant 0 : index
    %10 = vector.load %arg3[%c0_5, %c0_6] : memref<1x32xf32, #tpu.memory_space<vmem>>, vector<1x32xf32>
    %c0_7 = arith.constant 0 : index
    %c0_8 = arith.constant 0 : index
    %11 = vector.load %arg4[%c0_7, %c0_8] : memref<1x32xf32, #tpu.memory_space<vmem>>, vector<1x32xf32>
    %cst_9 = arith.constant dense<0.000000e+00> : vector<8xf32>
    %12 = vector.multi_reduction <add>, %9, %cst_9 [1] : vector<8x32xf32> to vector<8xf32>
    %13 = vector.shape_cast %12 : vector<8xf32> to vector<8x1xf32>
    %cst_10 = arith.constant 3.200000e+01 : f32
    %14 = vector.broadcast %cst_10 : f32 to vector<8x1xf32>
    %15 = arith.divf %13, %14 : vector<8x1xf32>
    %16 = vector.broadcast %15 : vector<8x1xf32> to vector<8x32xf32>
    %17 = arith.subf %9, %16 : vector<8x32xf32>
    %18 = arith.mulf %17, %17 : vector<8x32xf32>
    %cst_11 = arith.constant dense<0.000000e+00> : vector<8xf32>
    %19 = vector.multi_reduction <add>, %18, %cst_11 [1] : vector<8x32xf32> to vector<8xf32>
    %20 = vector.shape_cast %19 : vector<8xf32> to vector<8x1xf32>
    %cst_12 = arith.constant 3.200000e+01 : f32
    %21 = vector.broadcast %cst_12 : f32 to vector<8x1xf32>
    %22 = arith.divf %20, %21 : vector<8x1xf32>
    %23 = vector.broadcast %15 : vector<8x1xf32> to vector<8x32xf32>
    %24 = arith.subf %9, %23 : vector<8x32xf32>
    %cst_13 = arith.constant 9.99999996E-13 : f32
    %25 = vector.broadcast %cst_13 : f32 to vector<8x1xf32>
    %26 = arith.addf %22, %25 : vector<8x1xf32>
    %27 = math.rsqrt %26 : vector<8x1xf32>
    %28 = vector.broadcast %27 : vector<8x1xf32> to vector<8x32xf32>
    %29 = arith.mulf %24, %28 : vector<8x32xf32>
    %30 = vector.broadcast %10 : vector<1x32xf32> to vector<8x32xf32>
    %31 = arith.mulf %29, %30 : vector<8x32xf32>
    %32 = vector.broadcast %11 : vector<1x32xf32> to vector<8x32xf32>
    %33 = arith.addf %31, %32 : vector<8x32xf32>
    %34 = arith.truncf %33 : vector<8x32xf32> to vector<8x32xbf16>
    %35 = vector.shape_cast %34 : vector<8x32xbf16> to vector<1x8x32xbf16>
    %36 = vector.shape_cast %35 : vector<1x8x32xbf16> to vector<1x8x32xbf16>
    %37 = vector.broadcast %36 : vector<1x8x32xbf16> to vector<12x8x32xbf16>
    %c0_14 = arith.constant 0 : index
    %c0_15 = arith.constant 0 : index
    %c0_16 = arith.constant 0 : index
    %c0_17 = arith.constant 0 : index
    %38 = vector.load %arg5[%c0_14, %c0_15, %c0_16, %c0_17] : memref<2x12x32x8xbf16, #tpu.memory_space<vmem>>, vector<1x12x32x8xbf16>
    %39 = vector.shape_cast %38 : vector<1x12x32x8xbf16> to vector<12x32x8xbf16>
    "tpu.trace_start"() <{level = 10 : i32, message = "gth,ghd->gtd"}> : () -> ()
    %cst_18 = arith.constant dense<0.000000e+00> : vector<12x8x8xf32>
    %40 = tpu.matmul %37, %39, %cst_18 {dimension_numbers = #tpu.dot_dimension_numbers<[2], [1], [1], [2], [0, 0, 0, 1, 1, 2], [0], [0]>} : vector<12x8x32xbf16>, vector<12x32x8xbf16>, vector<12x8x8xf32> -> vector<12x8x8xf32>
    "tpu.trace_stop"() : () -> ()
    %c0_19 = arith.constant 0 : index
    %c0_20 = arith.constant 0 : index
    %c0_21 = arith.constant 0 : index
    %c0_22 = arith.constant 0 : index
    %41 = vector.load %arg6[%c0_19, %c0_20, %c0_21, %c0_22] : memref<2x12x1x8xf32, #tpu.memory_space<vmem>>, vector<1x12x1x8xf32>
    %42 = vector.shape_cast %41 : vector<1x12x1x8xf32> to vector<12x1x8xf32>
    %43 = vector.broadcast %42 : vector<12x1x8xf32> to vector<12x8x8xf32>
    %44 = arith.addf %40, %43 : vector<12x8x8xf32>
    %45 = vector.extract_strided_slice %44 {offsets = [0, 0, 0], sizes = [4, 8, 8], strides = [1, 1, 1]} : vector<12x8x8xf32> to vector<4x8x8xf32>
    %46 = arith.truncf %45 : vector<4x8x8xf32> to vector<4x8x8xbf16>
    %47 = vector.extract_strided_slice %44 {offsets = [4, 0, 0], sizes = [4, 8, 8], strides = [1, 1, 1]} : vector<12x8x8xf32> to vector<4x8x8xf32>
    %48 = arith.truncf %47 : vector<4x8x8xf32> to vector<4x8x8xbf16>
    %49 = vector.extract_strided_slice %44 {offsets = [8, 0, 0], sizes = [4, 8, 8], strides = [1, 1, 1]} : vector<12x8x8xf32> to vector<4x8x8xf32>
    %50 = arith.truncf %49 : vector<4x8x8xf32> to vector<4x8x8xbf16>
    "tpu.trace_start"() <{level = 10 : i32, message = "gqd,gkd->gqk"}> : () -> ()
    %cst_23 = arith.constant dense<0.000000e+00> : vector<4x8x8xf32>
    %51 = tpu.matmul %46, %48, %cst_23 {dimension_numbers = #tpu.dot_dimension_numbers<[2], [2], [1], [1], [0, 0, 0, 1, 1, 1], [0], [0]>} : vector<4x8x8xbf16>, vector<4x8x8xbf16>, vector<4x8x8xf32> -> vector<4x8x8xf32>
    "tpu.trace_stop"() : () -> ()
    %cst_24 = arith.constant dense<0xFF800000> : vector<4x8xf32>
    %52 = vector.multi_reduction <maximumf>, %51, %cst_24 [2] : vector<4x8x8xf32> to vector<4x8xf32>
    %53 = vector.shape_cast %52 : vector<4x8xf32> to vector<4x8x1xf32>
    %54 = vector.broadcast %53 : vector<4x8x1xf32> to vector<4x8x8xf32>
    %55 = arith.subf %51, %54 : vector<4x8x8xf32>
    %56 = math.exp %55 : vector<4x8x8xf32>
    %cst_25 = arith.constant dense<0.000000e+00> : vector<4x8xf32>
    %57 = vector.multi_reduction <add>, %56, %cst_25 [2] : vector<4x8x8xf32> to vector<4x8xf32>
    %58 = vector.shape_cast %57 : vector<4x8xf32> to vector<4x8x1xf32>
    %59 = tpu.reciprocal %58 {approx = true} : vector<4x8x1xf32> -> vector<4x8x1xf32>
    %60 = vector.broadcast %59 : vector<4x8x1xf32> to vector<4x8x8xf32>
    %61 = arith.mulf %56, %60 : vector<4x8x8xf32>
    %62 = arith.truncf %61 : vector<4x8x8xf32> to vector<4x8x8xbf16>
    "tpu.trace_start"() <{level = 10 : i32, message = "gqk,gkd->gqd"}> : () -> ()
    %cst_26 = arith.constant dense<0.000000e+00> : vector<4x8x8xf32>
    %63 = tpu.matmul %62, %50, %cst_26 {dimension_numbers = #tpu.dot_dimension_numbers<[2], [1], [1], [2], [0, 0, 0, 1, 1, 2], [0], [0]>} : vector<4x8x8xbf16>, vector<4x8x8xbf16>, vector<4x8x8xf32> -> vector<4x8x8xf32>
    "tpu.trace_stop"() : () -> ()
    %64 = arith.truncf %63 : vector<4x8x8xf32> to vector<4x8x8xbf16>
    %c0_27 = arith.constant 0 : index
    %c0_28 = arith.constant 0 : index
    %c0_29 = arith.constant 0 : index
    %c0_30 = arith.constant 0 : index
    %65 = vector.load %arg7[%c0_27, %c0_28, %c0_29, %c0_30] : memref<2x4x8x32xbf16, #tpu.memory_space<vmem>>, vector<1x4x8x32xbf16>
    %66 = vector.shape_cast %65 : vector<1x4x8x32xbf16> to vector<4x8x32xbf16>
    "tpu.trace_start"() <{level = 10 : i32, message = "gtd,gdh->gth"}> : () -> ()
    %cst_31 = arith.constant dense<0.000000e+00> : vector<4x8x32xf32>
    %67 = tpu.matmul %64, %66, %cst_31 {dimension_numbers = #tpu.dot_dimension_numbers<[2], [1], [1], [2], [0, 0, 0, 1, 1, 2], [0], [0]>} : vector<4x8x8xbf16>, vector<4x8x32xbf16>, vector<4x8x32xf32> -> vector<4x8x32xf32>
    "tpu.trace_stop"() : () -> ()
    %cst_32 = arith.constant dense<0.000000e+00> : vector<8x32xf32>
    %68 = vector.multi_reduction <add>, %67, %cst_32 [0] : vector<4x8x32xf32> to vector<8x32xf32>
    %c0_33 = arith.constant 0 : index
    %c0_34 = arith.constant 0 : index
    %c0_35 = arith.constant 0 : index
    %69 = vector.load %arg8[%c0_33, %c0_34, %c0_35] : memref<2x1x32xf32, #tpu.memory_space<vmem>>, vector<1x1x32xf32>
    %70 = vector.shape_cast %69 : vector<1x1x32xf32> to vector<1x32xf32>
    %71 = vector.broadcast %70 : vector<1x32xf32> to vector<8x32xf32>
    %72 = arith.addf %68, %71 : vector<8x32xf32>
    %73 = arith.addf %33, %72 : vector<8x32xf32>
    %c0_36 = arith.constant 0 : index
    %c0_37 = arith.constant 0 : index
    %c0_38 = arith.constant 0 : index
    %74 = vector.load %arg9[%c0_36, %c0_37, %c0_38] : memref<2x1x32xf32, #tpu.memory_space<vmem>>, vector<1x1x32xf32>
    %75 = vector.shape_cast %74 : vector<1x1x32xf32> to vector<1x32xf32>
    %c0_39 = arith.constant 0 : index
    %c0_40 = arith.constant 0 : index
    %c0_41 = arith.constant 0 : index
    %76 = vector.load %arg10[%c0_39, %c0_40, %c0_41] : memref<2x1x32xf32, #tpu.memory_space<vmem>>, vector<1x1x32xf32>
    %77 = vector.shape_cast %76 : vector<1x1x32xf32> to vector<1x32xf32>
    %cst_42 = arith.constant dense<0.000000e+00> : vector<8xf32>
    %78 = vector.multi_reduction <add>, %73, %cst_42 [1] : vector<8x32xf32> to vector<8xf32>
    %79 = vector.shape_cast %78 : vector<8xf32> to vector<8x1xf32>
    %cst_43 = arith.constant 3.200000e+01 : f32
    %80 = vector.broadcast %cst_43 : f32 to vector<8x1xf32>
    %81 = arith.divf %79, %80 : vector<8x1xf32>
    %82 = vector.broadcast %81 : vector<8x1xf32> to vector<8x32xf32>
    %83 = arith.subf %73, %82 : vector<8x32xf32>
    %84 = arith.mulf %83, %83 : vector<8x32xf32>
    %cst_44 = arith.constant dense<0.000000e+00> : vector<8xf32>
    %85 = vector.multi_reduction <add>, %84, %cst_44 [1] : vector<8x32xf32> to vector<8xf32>
    %86 = vector.shape_cast %85 : vector<8xf32> to vector<8x1xf32>
    %cst_45 = arith.constant 3.200000e+01 : f32
    %87 = vector.broadcast %cst_45 : f32 to vector<8x1xf32>
    %88 = arith.divf %86, %87 : vector<8x1xf32>
    %89 = vector.broadcast %81 : vector<8x1xf32> to vector<8x32xf32>
    %90 = arith.subf %73, %89 : vector<8x32xf32>
    %cst_46 = arith.constant 9.99999996E-13 : f32
    %91 = vector.broadcast %cst_46 : f32 to vector<8x1xf32>
    %92 = arith.addf %88, %91 : vector<8x1xf32>
    %93 = math.rsqrt %92 : vector<8x1xf32>
    %94 = vector.broadcast %93 : vector<8x1xf32> to vector<8x32xf32>
    %95 = arith.mulf %90, %94 : vector<8x32xf32>
    %96 = vector.broadcast %75 : vector<1x32xf32> to vector<8x32xf32>
    %97 = arith.mulf %95, %96 : vector<8x32xf32>
    %98 = vector.broadcast %77 : vector<1x32xf32> to vector<8x32xf32>
    %99 = arith.addf %97, %98 : vector<8x32xf32>
    %100 = arith.truncf %99 : vector<8x32xf32> to vector<8x32xbf16>
    %c0_47 = arith.constant 0 : index
    %c0_48 = arith.constant 0 : index
    %c0_49 = arith.constant 0 : index
    %101 = vector.load %arg11[%c0_47, %c0_48, %c0_49] : memref<2x32x128xbf16, #tpu.memory_space<vmem>>, vector<1x32x128xbf16>
    %102 = vector.shape_cast %101 : vector<1x32x128xbf16> to vector<32x128xbf16>
    %cst_50 = arith.constant dense<0.000000e+00> : vector<8x128xf32>
    %103 = tpu.matmul %100, %102, %cst_50 {dimension_numbers = #tpu.dot_dimension_numbers<[1], [0], [0], [1], [0, 0, 1, 1], [], []>} : vector<8x32xbf16>, vector<32x128xbf16>, vector<8x128xf32> -> vector<8x128xf32>
    %c0_51 = arith.constant 0 : index
    %c0_52 = arith.constant 0 : index
    %c0_53 = arith.constant 0 : index
    %104 = vector.load %arg12[%c0_51, %c0_52, %c0_53] : memref<2x1x128xf32, #tpu.memory_space<vmem>>, vector<1x1x128xf32>
    %105 = vector.shape_cast %104 : vector<1x1x128xf32> to vector<1x128xf32>
    %106 = vector.broadcast %105 : vector<1x128xf32> to vector<8x128xf32>
    %107 = arith.addf %103, %106 : vector<8x128xf32>
    %cst_54 = arith.constant 5.000000e-01 : f32
    %108 = vector.broadcast %cst_54 : f32 to vector<8x128xf32>
    %109 = arith.mulf %108, %107 : vector<8x128xf32>
    %cst_55 = arith.constant 4.471500e-02 : f32
    %110 = vector.broadcast %cst_55 : f32 to vector<8x128xf32>
    %111 = arith.mulf %110, %107 : vector<8x128xf32>
    %112 = arith.mulf %111, %107 : vector<8x128xf32>
    %113 = arith.mulf %112, %107 : vector<8x128xf32>
    %114 = arith.addf %107, %113 : vector<8x128xf32>
    %cst_56 = arith.constant 0.797884583 : f32
    %115 = vector.broadcast %cst_56 : f32 to vector<8x128xf32>
    %116 = arith.mulf %115, %114 : vector<8x128xf32>
    %117 = math.tanh %116 : vector<8x128xf32>
    %cst_57 = arith.constant 1.000000e+00 : f32
    %118 = vector.broadcast %cst_57 : f32 to vector<8x128xf32>
    %119 = arith.addf %118, %117 : vector<8x128xf32>
    %120 = arith.mulf %109, %119 : vector<8x128xf32>
    %121 = arith.truncf %120 : vector<8x128xf32> to vector<8x128xbf16>
    %c0_58 = arith.constant 0 : index
    %c0_59 = arith.constant 0 : index
    %c0_60 = arith.constant 0 : index
    %122 = vector.load %arg13[%c0_58, %c0_59, %c0_60] : memref<2x128x32xbf16, #tpu.memory_space<vmem>>, vector<1x128x32xbf16>
    %123 = vector.shape_cast %122 : vector<1x128x32xbf16> to vector<128x32xbf16>
    %cst_61 = arith.constant dense<0.000000e+00> : vector<8x32xf32>
    %124 = tpu.matmul %121, %123, %cst_61 {dimension_numbers = #tpu.dot_dimension_numbers<[1], [0], [0], [1], [0, 0, 1, 1], [], []>} : vector<8x128xbf16>, vector<128x32xbf16>, vector<8x32xf32> -> vector<8x32xf32>
    %c0_62 = arith.constant 0 : index
    %c0_63 = arith.constant 0 : index
    %c0_64 = arith.constant 0 : index
    %125 = vector.load %arg14[%c0_62, %c0_63, %c0_64] : memref<2x1x32xf32, #tpu.memory_space<vmem>>, vector<1x1x32xf32>
    %126 = vector.shape_cast %125 : vector<1x1x32xf32> to vector<1x32xf32>
    %127 = vector.broadcast %126 : vector<1x32xf32> to vector<8x32xf32>
    %128 = arith.addf %124, %127 : vector<8x32xf32>
    %129 = arith.addf %99, %128 : vector<8x32xf32>
    %c0_65 = arith.constant 0 : index
    %c0_66 = arith.constant 0 : index
    %c0_67 = arith.constant 0 : index
    %130 = vector.load %arg15[%c0_65, %c0_66, %c0_67] : memref<2x1x32xf32, #tpu.memory_space<vmem>>, vector<1x1x32xf32>
    %131 = vector.shape_cast %130 : vector<1x1x32xf32> to vector<1x32xf32>
    %c0_68 = arith.constant 0 : index
    %c0_69 = arith.constant 0 : index
    %c0_70 = arith.constant 0 : index
    %132 = vector.load %arg16[%c0_68, %c0_69, %c0_70] : memref<2x1x32xf32, #tpu.memory_space<vmem>>, vector<1x1x32xf32>
    %133 = vector.shape_cast %132 : vector<1x1x32xf32> to vector<1x32xf32>
    %cst_71 = arith.constant dense<0.000000e+00> : vector<8xf32>
    %134 = vector.multi_reduction <add>, %129, %cst_71 [1] : vector<8x32xf32> to vector<8xf32>
    %135 = vector.shape_cast %134 : vector<8xf32> to vector<8x1xf32>
    %cst_72 = arith.constant 3.200000e+01 : f32
    %136 = vector.broadcast %cst_72 : f32 to vector<8x1xf32>
    %137 = arith.divf %135, %136 : vector<8x1xf32>
    %138 = vector.broadcast %137 : vector<8x1xf32> to vector<8x32xf32>
    %139 = arith.subf %129, %138 : vector<8x32xf32>
    %140 = arith.mulf %139, %139 : vector<8x32xf32>
    %cst_73 = arith.constant dense<0.000000e+00> : vector<8xf32>
    %141 = vector.multi_reduction <add>, %140, %cst_73 [1] : vector<8x32xf32> to vector<8xf32>
    %142 = vector.shape_cast %141 : vector<8xf32> to vector<8x1xf32>
    %cst_74 = arith.constant 3.200000e+01 : f32
    %143 = vector.broadcast %cst_74 : f32 to vector<8x1xf32>
    %144 = arith.divf %142, %143 : vector<8x1xf32>
    %145 = vector.broadcast %137 : vector<8x1xf32> to vector<8x32xf32>
    %146 = arith.subf %129, %145 : vector<8x32xf32>
    %cst_75 = arith.constant 9.99999996E-13 : f32
    %147 = vector.broadcast %cst_75 : f32 to vector<8x1xf32>
    %148 = arith.addf %144, %147 : vector<8x1xf32>
    %149 = math.rsqrt %148 : vector<8x1xf32>
    %150 = vector.broadcast %149 : vector<8x1xf32> to vector<8x32xf32>
    %151 = arith.mulf %146, %150 : vector<8x32xf32>
    %152 = vector.broadcast %131 : vector<1x32xf32> to vector<8x32xf32>
    %153 = arith.mulf %151, %152 : vector<8x32xf32>
    %154 = vector.broadcast %133 : vector<1x32xf32> to vector<8x32xf32>
    %155 = arith.addf %153, %154 : vector<8x32xf32>
    %156 = arith.truncf %155 : vector<8x32xf32> to vector<8x32xbf16>
    %157 = vector.shape_cast %156 : vector<8x32xbf16> to vector<1x8x32xbf16>
    %158 = vector.shape_cast %157 : vector<1x8x32xbf16> to vector<1x8x32xbf16>
    %159 = vector.broadcast %158 : vector<1x8x32xbf16> to vector<12x8x32xbf16>
    %c1 = arith.constant 1 : index
    %c0_76 = arith.constant 0 : index
    %c0_77 = arith.constant 0 : index
    %c0_78 = arith.constant 0 : index
    %160 = vector.load %arg5[%c1, %c0_76, %c0_77, %c0_78] : memref<2x12x32x8xbf16, #tpu.memory_space<vmem>>, vector<1x12x32x8xbf16>
    %161 = vector.shape_cast %160 : vector<1x12x32x8xbf16> to vector<12x32x8xbf16>
    "tpu.trace_start"() <{level = 10 : i32, message = "gth,ghd->gtd"}> : () -> ()
    %cst_79 = arith.constant dense<0.000000e+00> : vector<12x8x8xf32>
    %162 = tpu.matmul %159, %161, %cst_79 {dimension_numbers = #tpu.dot_dimension_numbers<[2], [1], [1], [2], [0, 0, 0, 1, 1, 2], [0], [0]>} : vector<12x8x32xbf16>, vector<12x32x8xbf16>, vector<12x8x8xf32> -> vector<12x8x8xf32>
    "tpu.trace_stop"() : () -> ()
    %c1_80 = arith.constant 1 : index
    %c0_81 = arith.constant 0 : index
    %c0_82 = arith.constant 0 : index
    %c0_83 = arith.constant 0 : index
    %163 = vector.load %arg6[%c1_80, %c0_81, %c0_82, %c0_83] : memref<2x12x1x8xf32, #tpu.memory_space<vmem>>, vector<1x12x1x8xf32>
    %164 = vector.shape_cast %163 : vector<1x12x1x8xf32> to vector<12x1x8xf32>
    %165 = vector.broadcast %164 : vector<12x1x8xf32> to vector<12x8x8xf32>
    %166 = arith.addf %162, %165 : vector<12x8x8xf32>
    %167 = vector.extract_strided_slice %166 {offsets = [0, 0, 0], sizes = [4, 8, 8], strides = [1, 1, 1]} : vector<12x8x8xf32> to vector<4x8x8xf32>
    %168 = arith.truncf %167 : vector<4x8x8xf32> to vector<4x8x8xbf16>
    %169 = vector.extract_strided_slice %166 {offsets = [4, 0, 0], sizes = [4, 8, 8], strides = [1, 1, 1]} : vector<12x8x8xf32> to vector<4x8x8xf32>
    %170 = arith.truncf %169 : vector<4x8x8xf32> to vector<4x8x8xbf16>
    %171 = vector.extract_strided_slice %166 {offsets = [8, 0, 0], sizes = [4, 8, 8], strides = [1, 1, 1]} : vector<12x8x8xf32> to vector<4x8x8xf32>
    %172 = arith.truncf %171 : vector<4x8x8xf32> to vector<4x8x8xbf16>
    "tpu.trace_start"() <{level = 10 : i32, message = "gqd,gkd->gqk"}> : () -> ()
    %cst_84 = arith.constant dense<0.000000e+00> : vector<4x8x8xf32>
    %173 = tpu.matmul %168, %170, %cst_84 {dimension_numbers = #tpu.dot_dimension_numbers<[2], [2], [1], [1], [0, 0, 0, 1, 1, 1], [0], [0]>} : vector<4x8x8xbf16>, vector<4x8x8xbf16>, vector<4x8x8xf32> -> vector<4x8x8xf32>
    "tpu.trace_stop"() : () -> ()
    %cst_85 = arith.constant dense<0xFF800000> : vector<4x8xf32>
    %174 = vector.multi_reduction <maximumf>, %173, %cst_85 [2] : vector<4x8x8xf32> to vector<4x8xf32>
    %175 = vector.shape_cast %174 : vector<4x8xf32> to vector<4x8x1xf32>
    %176 = vector.broadcast %175 : vector<4x8x1xf32> to vector<4x8x8xf32>
    %177 = arith.subf %173, %176 : vector<4x8x8xf32>
    %178 = math.exp %177 : vector<4x8x8xf32>
    %cst_86 = arith.constant dense<0.000000e+00> : vector<4x8xf32>
    %179 = vector.multi_reduction <add>, %178, %cst_86 [2] : vector<4x8x8xf32> to vector<4x8xf32>
    %180 = vector.shape_cast %179 : vector<4x8xf32> to vector<4x8x1xf32>
    %181 = tpu.reciprocal %180 {approx = true} : vector<4x8x1xf32> -> vector<4x8x1xf32>
    %182 = vector.broadcast %181 : vector<4x8x1xf32> to vector<4x8x8xf32>
    %183 = arith.mulf %178, %182 : vector<4x8x8xf32>
    %184 = arith.truncf %183 : vector<4x8x8xf32> to vector<4x8x8xbf16>
    "tpu.trace_start"() <{level = 10 : i32, message = "gqk,gkd->gqd"}> : () -> ()
    %cst_87 = arith.constant dense<0.000000e+00> : vector<4x8x8xf32>
    %185 = tpu.matmul %184, %172, %cst_87 {dimension_numbers = #tpu.dot_dimension_numbers<[2], [1], [1], [2], [0, 0, 0, 1, 1, 2], [0], [0]>} : vector<4x8x8xbf16>, vector<4x8x8xbf16>, vector<4x8x8xf32> -> vector<4x8x8xf32>
    "tpu.trace_stop"() : () -> ()
    %186 = arith.truncf %185 : vector<4x8x8xf32> to vector<4x8x8xbf16>
    %c1_88 = arith.constant 1 : index
    %c0_89 = arith.constant 0 : index
    %c0_90 = arith.constant 0 : index
    %c0_91 = arith.constant 0 : index
    %187 = vector.load %arg7[%c1_88, %c0_89, %c0_90, %c0_91] : memref<2x4x8x32xbf16, #tpu.memory_space<vmem>>, vector<1x4x8x32xbf16>
    %188 = vector.shape_cast %187 : vector<1x4x8x32xbf16> to vector<4x8x32xbf16>
    "tpu.trace_start"() <{level = 10 : i32, message = "gtd,gdh->gth"}> : () -> ()
    %cst_92 = arith.constant dense<0.000000e+00> : vector<4x8x32xf32>
    %189 = tpu.matmul %186, %188, %cst_92 {dimension_numbers = #tpu.dot_dimension_numbers<[2], [1], [1], [2], [0, 0, 0, 1, 1, 2], [0], [0]>} : vector<4x8x8xbf16>, vector<4x8x32xbf16>, vector<4x8x32xf32> -> vector<4x8x32xf32>
    "tpu.trace_stop"() : () -> ()
    %cst_93 = arith.constant dense<0.000000e+00> : vector<8x32xf32>
    %190 = vector.multi_reduction <add>, %189, %cst_93 [0] : vector<4x8x32xf32> to vector<8x32xf32>
    %c1_94 = arith.constant 1 : index
    %c0_95 = arith.constant 0 : index
    %c0_96 = arith.constant 0 : index
    %191 = vector.load %arg8[%c1_94, %c0_95, %c0_96] : memref<2x1x32xf32, #tpu.memory_space<vmem>>, vector<1x1x32xf32>
    %192 = vector.shape_cast %191 : vector<1x1x32xf32> to vector<1x32xf32>
    %193 = vector.broadcast %192 : vector<1x32xf32> to vector<8x32xf32>
    %194 = arith.addf %190, %193 : vector<8x32xf32>
    %195 = arith.addf %155, %194 : vector<8x32xf32>
    %c1_97 = arith.constant 1 : index
    %c0_98 = arith.constant 0 : index
    %c0_99 = arith.constant 0 : index
    %196 = vector.load %arg9[%c1_97, %c0_98, %c0_99] : memref<2x1x32xf32, #tpu.memory_space<vmem>>, vector<1x1x32xf32>
    %197 = vector.shape_cast %196 : vector<1x1x32xf32> to vector<1x32xf32>
    %c1_100 = arith.constant 1 : index
    %c0_101 = arith.constant 0 : index
    %c0_102 = arith.constant 0 : index
    %198 = vector.load %arg10[%c1_100, %c0_101, %c0_102] : memref<2x1x32xf32, #tpu.memory_space<vmem>>, vector<1x1x32xf32>
    %199 = vector.shape_cast %198 : vector<1x1x32xf32> to vector<1x32xf32>
    %cst_103 = arith.constant dense<0.000000e+00> : vector<8xf32>
    %200 = vector.multi_reduction <add>, %195, %cst_103 [1] : vector<8x32xf32> to vector<8xf32>
    %201 = vector.shape_cast %200 : vector<8xf32> to vector<8x1xf32>
    %cst_104 = arith.constant 3.200000e+01 : f32
    %202 = vector.broadcast %cst_104 : f32 to vector<8x1xf32>
    %203 = arith.divf %201, %202 : vector<8x1xf32>
    %204 = vector.broadcast %203 : vector<8x1xf32> to vector<8x32xf32>
    %205 = arith.subf %195, %204 : vector<8x32xf32>
    %206 = arith.mulf %205, %205 : vector<8x32xf32>
    %cst_105 = arith.constant dense<0.000000e+00> : vector<8xf32>
    %207 = vector.multi_reduction <add>, %206, %cst_105 [1] : vector<8x32xf32> to vector<8xf32>
    %208 = vector.shape_cast %207 : vector<8xf32> to vector<8x1xf32>
    %cst_106 = arith.constant 3.200000e+01 : f32
    %209 = vector.broadcast %cst_106 : f32 to vector<8x1xf32>
    %210 = arith.divf %208, %209 : vector<8x1xf32>
    %211 = vector.broadcast %203 : vector<8x1xf32> to vector<8x32xf32>
    %212 = arith.subf %195, %211 : vector<8x32xf32>
    %cst_107 = arith.constant 9.99999996E-13 : f32
    %213 = vector.broadcast %cst_107 : f32 to vector<8x1xf32>
    %214 = arith.addf %210, %213 : vector<8x1xf32>
    %215 = math.rsqrt %214 : vector<8x1xf32>
    %216 = vector.broadcast %215 : vector<8x1xf32> to vector<8x32xf32>
    %217 = arith.mulf %212, %216 : vector<8x32xf32>
    %218 = vector.broadcast %197 : vector<1x32xf32> to vector<8x32xf32>
    %219 = arith.mulf %217, %218 : vector<8x32xf32>
    %220 = vector.broadcast %199 : vector<1x32xf32> to vector<8x32xf32>
    %221 = arith.addf %219, %220 : vector<8x32xf32>
    %222 = arith.truncf %221 : vector<8x32xf32> to vector<8x32xbf16>
    %c1_108 = arith.constant 1 : index
    %c0_109 = arith.constant 0 : index
    %c0_110 = arith.constant 0 : index
    %223 = vector.load %arg11[%c1_108, %c0_109, %c0_110] : memref<2x32x128xbf16, #tpu.memory_space<vmem>>, vector<1x32x128xbf16>
    %224 = vector.shape_cast %223 : vector<1x32x128xbf16> to vector<32x128xbf16>
    %cst_111 = arith.constant dense<0.000000e+00> : vector<8x128xf32>
    %225 = tpu.matmul %222, %224, %cst_111 {dimension_numbers = #tpu.dot_dimension_numbers<[1], [0], [0], [1], [0, 0, 1, 1], [], []>} : vector<8x32xbf16>, vector<32x128xbf16>, vector<8x128xf32> -> vector<8x128xf32>
    %c1_112 = arith.constant 1 : index
    %c0_113 = arith.constant 0 : index
    %c0_114 = arith.constant 0 : index
    %226 = vector.load %arg12[%c1_112, %c0_113, %c0_114] : memref<2x1x128xf32, #tpu.memory_space<vmem>>, vector<1x1x128xf32>
    %227 = vector.shape_cast %226 : vector<1x1x128xf32> to vector<1x128xf32>
    %228 = vector.broadcast %227 : vector<1x128xf32> to vector<8x128xf32>
    %229 = arith.addf %225, %228 : vector<8x128xf32>
    %cst_115 = arith.constant 5.000000e-01 : f32
    %230 = vector.broadcast %cst_115 : f32 to vector<8x128xf32>
    %231 = arith.mulf %230, %229 : vector<8x128xf32>
    %cst_116 = arith.constant 4.471500e-02 : f32
    %232 = vector.broadcast %cst_116 : f32 to vector<8x128xf32>
    %233 = arith.mulf %232, %229 : vector<8x128xf32>
    %234 = arith.mulf %233, %229 : vector<8x128xf32>
    %235 = arith.mulf %234, %229 : vector<8x128xf32>
    %236 = arith.addf %229, %235 : vector<8x128xf32>
    %cst_117 = arith.constant 0.797884583 : f32
    %237 = vector.broadcast %cst_117 : f32 to vector<8x128xf32>
    %238 = arith.mulf %237, %236 : vector<8x128xf32>
    %239 = math.tanh %238 : vector<8x128xf32>
    %cst_118 = arith.constant 1.000000e+00 : f32
    %240 = vector.broadcast %cst_118 : f32 to vector<8x128xf32>
    %241 = arith.addf %240, %239 : vector<8x128xf32>
    %242 = arith.mulf %231, %241 : vector<8x128xf32>
    %243 = arith.truncf %242 : vector<8x128xf32> to vector<8x128xbf16>
    %c1_119 = arith.constant 1 : index
    %c0_120 = arith.constant 0 : index
    %c0_121 = arith.constant 0 : index
    %244 = vector.load %arg13[%c1_119, %c0_120, %c0_121] : memref<2x128x32xbf16, #tpu.memory_space<vmem>>, vector<1x128x32xbf16>
    %245 = vector.shape_cast %244 : vector<1x128x32xbf16> to vector<128x32xbf16>
    %cst_122 = arith.constant dense<0.000000e+00> : vector<8x32xf32>
    %246 = tpu.matmul %243, %245, %cst_122 {dimension_numbers = #tpu.dot_dimension_numbers<[1], [0], [0], [1], [0, 0, 1, 1], [], []>} : vector<8x128xbf16>, vector<128x32xbf16>, vector<8x32xf32> -> vector<8x32xf32>
    %c1_123 = arith.constant 1 : index
    %c0_124 = arith.constant 0 : index
    %c0_125 = arith.constant 0 : index
    %247 = vector.load %arg14[%c1_123, %c0_124, %c0_125] : memref<2x1x32xf32, #tpu.memory_space<vmem>>, vector<1x1x32xf32>
    %248 = vector.shape_cast %247 : vector<1x1x32xf32> to vector<1x32xf32>
    %249 = vector.broadcast %248 : vector<1x32xf32> to vector<8x32xf32>
    %250 = arith.addf %246, %249 : vector<8x32xf32>
    %251 = arith.addf %221, %250 : vector<8x32xf32>
    %c1_126 = arith.constant 1 : index
    %c0_127 = arith.constant 0 : index
    %c0_128 = arith.constant 0 : index
    %252 = vector.load %arg15[%c1_126, %c0_127, %c0_128] : memref<2x1x32xf32, #tpu.memory_space<vmem>>, vector<1x1x32xf32>
    %253 = vector.shape_cast %252 : vector<1x1x32xf32> to vector<1x32xf32>
    %c1_129 = arith.constant 1 : index
    %c0_130 = arith.constant 0 : index
    %c0_131 = arith.constant 0 : index
    %254 = vector.load %arg16[%c1_129, %c0_130, %c0_131] : memref<2x1x32xf32, #tpu.memory_space<vmem>>, vector<1x1x32xf32>
    %255 = vector.shape_cast %254 : vector<1x1x32xf32> to vector<1x32xf32>
    %cst_132 = arith.constant dense<0.000000e+00> : vector<8xf32>
    %256 = vector.multi_reduction <add>, %251, %cst_132 [1] : vector<8x32xf32> to vector<8xf32>
    %257 = vector.shape_cast %256 : vector<8xf32> to vector<8x1xf32>
    %cst_133 = arith.constant 3.200000e+01 : f32
    %258 = vector.broadcast %cst_133 : f32 to vector<8x1xf32>
    %259 = arith.divf %257, %258 : vector<8x1xf32>
    %260 = vector.broadcast %259 : vector<8x1xf32> to vector<8x32xf32>
    %261 = arith.subf %251, %260 : vector<8x32xf32>
    %262 = arith.mulf %261, %261 : vector<8x32xf32>
    %cst_134 = arith.constant dense<0.000000e+00> : vector<8xf32>
    %263 = vector.multi_reduction <add>, %262, %cst_134 [1] : vector<8x32xf32> to vector<8xf32>
    %264 = vector.shape_cast %263 : vector<8xf32> to vector<8x1xf32>
    %cst_135 = arith.constant 3.200000e+01 : f32
    %265 = vector.broadcast %cst_135 : f32 to vector<8x1xf32>
    %266 = arith.divf %264, %265 : vector<8x1xf32>
    %267 = vector.broadcast %259 : vector<8x1xf32> to vector<8x32xf32>
    %268 = arith.subf %251, %267 : vector<8x32xf32>
    %cst_136 = arith.constant 9.99999996E-13 : f32
    %269 = vector.broadcast %cst_136 : f32 to vector<8x1xf32>
    %270 = arith.addf %266, %269 : vector<8x1xf32>
    %271 = math.rsqrt %270 : vector<8x1xf32>
    %272 = vector.broadcast %271 : vector<8x1xf32> to vector<8x32xf32>
    %273 = arith.mulf %268, %272 : vector<8x32xf32>
    %274 = vector.broadcast %253 : vector<1x32xf32> to vector<8x32xf32>
    %275 = arith.mulf %273, %274 : vector<8x32xf32>
    %276 = vector.broadcast %255 : vector<1x32xf32> to vector<8x32xf32>
    %277 = arith.addf %275, %276 : vector<8x32xf32>
    %c0_137 = arith.constant 0 : index
    %c0_138 = arith.constant 0 : index
    %278 = vector.load %arg17[%c0_137, %c0_138] : memref<8x32xf32, #tpu.memory_space<vmem>>, vector<8x32xf32>
    tpu.vector_store %arg17[%c0_137, %c0_138], %277 {strides = array<i32>} : memref<8x32xf32, #tpu.memory_space<vmem>>, vector<8x32xf32>,
    return
  }
}

</mosaic_0001>

<bundles_post_ra>
// kernel: tpu_custom_call.1
= control target key start
LH: loop header
LB: loop body
LE: loop exit
PB: predicated region body
PF: predicated region fallthrough
CT: control target
= control target key end

     0   :  { %s5378_s0 = inlined_call_operand.vmem [shape: s32[8,1], index: 0, kind: input, shape index: {}]   ;;  %s5379_s1 = inlined_call_operand.vmem [shape: f32[128,32], index: 1, kind: input, shape index: {}]   ;;  %s5380_s2 = inlined_call_operand.vmem [shape: f32[8,32], index: 2, kind: input, shape index: {}]   ;;  %s5381_s3 = inlined_call_operand.vmem [shape: f32[1,32], index: 3, kind: input, shape index: {}]   ;;  %s5382_s4 = inlined_call_operand.vmem [shape: f32[1,32], index: 4, kind: input, shape index: {}]   ;;  %s5383_s5 = inlined_call_operand.vmem [shape: bf16[2,12,32,8], index: 5, kind: input, shape index: {}]   ;;  %s5384_s6 = inlined_call_operand.vmem [shape: f32[2,12,1,8], index: 6, kind: input, shape index: {}]   ;;  %s5385_s7 = inlined_call_operand.vmem [shape: bf16[2,4,8,32], index: 7, kind: input, shape index: {}]   ;;  %s5386_s8 = inlined_call_operand.vmem [shape: f32[2,1,32], index: 8, kind: input, shape index: {}]   ;;  %s5387_s9 = inlined_call_operand.vmem [shape: f32[2,1,32], index: 9, kind: input, shape index: {}]   ;;  %s5388_s10 = inlined_call_operand.vmem [shape: f32[2,1,32], index: 10, kind: input, shape index: {}]   ;;  %s5389_s11 = inlined_call_operand.vmem [shape: bf16[2,32,128], index: 11, kind: input, shape index: {}]   ;;  %s5390_s12 = inlined_call_operand.vmem [shape: f32[2,1,128], index: 12, kind: input, shape index: {}]   ;;  %s5391_s13 = inlined_call_operand.vmem [shape: bf16[2,128,32], index: 13, kind: input, shape index: {}]   ;;  %s5392_s14 = inlined_call_operand.vmem [shape: f32[2,1,32], index: 14, kind: input, shape index: {}]   ;;  %s5393_s15 = inlined_call_operand.vmem [shape: f32[2,1,32], index: 15, kind: input, shape index: {}]   ;;  %s5394_s16 = inlined_call_operand.vmem [shape: f32[2,1,32], index: 16, kind: input, shape index: {}]   ;;  %s5395_s17 = inlined_call_operand.hbm [shape: f32[8,32], index: 17, kind: output, shape index: {}]  }
   0x1   :  { %5398 = sst [smem:[#allocation5_spill]] %s5378_s0 }
   0x2   :  { %5399 = sst [smem:[#allocation6_spill]] %s5379_s1 }
   0x3   :  { %5400 = sst [smem:[#allocation7_spill]] %s5390_s12 }
   0x4   :  { %s5401_s26 = sld [smem:[#allocation5_spill]]  ;;  %s5402_s12 = sld [smem:[#allocation6_spill]]  ;;  %v4508_v3 = vmov 0   ;;  %v4509_v4 = vmov 0.0|0.0   ;;  %vm4510_vm0 = vmmov 0   ;;  %v4511_v8 = vmov 0.0  }
   0x5   :  { %4369 = vset.pattern.permute.xlu0 %v4508_v3  ;;  %4339 = vmatprep.subr.bf16.mxu0 %v4509_v4 }
   0x6   :  { %3944 = vmatprep.mubr.msk.f32.mxu0 %vm4510_vm0, %v4511_v8  ;;  %3947 = vmatprep.subr.bf16.mxu1 %v4511_v8 }
   0x7   :  { %3951 = vmatprep.mubr.msk.bf16.mxu1 %vm4510_vm0, %v4511_v8 }
   0xa   :  { %v58_v0 = vld [vmem:[%s5401_s26] sm:$0xff]  ;;  %v68_v2 = vld [vmem:[%s5402_s12 + $0x8] sm:$0xff]  ;;  %v69_v6 = vld [vmem:[%s5402_s12 + $0x10] sm:$0xff] }
   0xb   :  { %v67_v1 = vld [vmem:[%s5402_s12] sm:$0xff]  ;;  %v70_v7 = vld [vmem:[%s5402_s12 + $0x18] sm:$0xff]  ;;  %62 = vperm.xlu0 %4369, %v58_v0   ;;  %v72_v11 = vld [vmem:[%s5402_s12 + $0x28] sm:$0xff] }
   0xc   :  { %v4340_v5 = vpack.c.bf16 %v68_v2, %v67_v1  ;;  %v4343_v9 = vpack.c.bf16 %v70_v7, %v69_v6  ;;  %v71_v10 = vld [vmem:[%s5402_s12 + $0x20] sm:$0xff]  ;;  %v73_v12 = vld [vmem:[%s5402_s12 + $0x30] sm:$0xff]  ;;  %v74_v13 = vld [vmem:[%s5402_s12 + $0x38] sm:$0xff] }
   0xd   :  { %v4346_v14 = vpack.c.bf16 %v72_v11, %v71_v10  ;;  %v75_v15 = vld [vmem:[%s5402_s12 + $0x40] sm:$0xff]  ;;  %v76_v16 = vld [vmem:[%s5402_s12 + $0x48] sm:$0xff]  ;;  %v4349_v17 = vpack.c.bf16 %v74_v13, %v73_v12  ;;  %v77_v18 = vld [vmem:[%s5402_s12 + $0x50] sm:$0xff] }
   0xe   :  { %4341 = vmatpush3.bf16.msra.mxu0 %v4340_v5  ;;  %v78_v19 = vld [vmem:[%s5402_s12 + $0x58] sm:$0xff]  ;;  %v4352_v20 = vpack.c.bf16 %v76_v16, %v75_v15  ;;  %v79_v21 = vld [vmem:[%s5402_s12 + $0x60] sm:$0xff]  ;;  %v80_v22 = vld [vmem:[%s5402_s12 + $0x68] sm:$0xff] }
   0xf   :  { %4342 = vmatprep.subr.bf16.mxu0 %v4509_v4  ;;  %v4355_v23 = vpack.c.bf16 %v78_v19, %v77_v18  ;;  %v81_v24 = vld [vmem:[%s5402_s12 + $0x70] sm:$0xff]  ;;  %v82_v25 = vld [vmem:[%s5402_s12 + $0x78] sm:$0xff]  ;;  %v4358_v26 = vpack.c.bf16 %v80_v22, %v79_v21 }
  0x10   :  { %v4361_v27 = vpack.c.bf16 %v82_v25, %v81_v24 }
  0x12   :  { %4344 = vmatpush3.bf16.msra.mxu0 %v4343_v9 }
  0x13   :  { %4345 = vmatprep.subr.bf16.mxu0 %v4509_v4 }
  0x16   :  { %4347 = vmatpush3.bf16.msra.mxu0 %v4346_v14 }
  0x17   :  { %4348 = vmatprep.subr.bf16.mxu0 %v4509_v4 }
  0x1a   :  { %4350 = vmatpush3.bf16.msra.mxu0 %v4349_v17 }
  0x1b   :  { %4351 = vmatprep.subr.bf16.mxu0 %v4509_v4 }
  0x1e   :  { %4353 = vmatpush3.bf16.msra.mxu0 %v4352_v20 }
  0x1f   :  { %4354 = vmatprep.subr.bf16.mxu0 %v4509_v4 }
  0x22   :  { %4356 = vmatpush3.bf16.msra.mxu0 %v4355_v23 }
  0x23   :  { %4357 = vmatprep.subr.bf16.mxu0 %v4509_v4 }
  0x26   :  { %4359 = vmatpush3.bf16.msra.mxu0 %v4358_v26 }
  0x27   :  { %4360 = vmatprep.subr.bf16.mxu0 %v4509_v4 }
  0x2a   :  { %4362 = vmatpush3.bf16.msra.mxu0 %v4361_v27 }
  0x2b   :  { %4011 = vmatprep.subr.bf16.mxu0 %v4511_v8 }
  0x2c   :  { %22 = vsyncpa [#allocation3], 0  ;;  %v59_v28 = vlaneseq  ;;  %v4512_v31 = vmov 1.0   ;;  %v83_v32 = vld [vmem:[%s5380_s2] sm:$0xff]  ;;  %vm156_vm2 = vcmask 261120   ;;  %v4372_v44 = vld [vmem:[%s5383_s5 + $0x8] sm:$0xff]  }
  0x2d   :  { %v4370_v42 = vld [vmem:[%s5383_s5] sm:$0xff]   ;;  %v4373_v45 = vld [vmem:[%s5383_s5 + $0x88] sm:$0xff]   ;;  %v4374_v55 = vld [vmem:[%s5383_s5 + $0x10] sm:$0xff]   ;;  %vm957_vm3 = vcmask 64512   ;;  %vm1193_vm4 = vcmask 1043456   ;;  %s4513_s28 = smov [#allocation2]  }
  0x2e   :  { %v60_v29 = vand.u32 127, %v59_v28  ;;  %v4371_v43 = vld [vmem:[%s5383_s5 + $0x80] sm:$0xff]   ;;  %3948 = vmatpush3.bf16.msra.mxu1 %v4370_v42  ;;  %v4376_v58 = vld [vmem:[%s5383_s5 + $0x18] sm:$0xff]   ;;  %v4377_v59 = vld [vmem:[%s5383_s5 + $0xa8] sm:$0xff]   ;;  %s3492_s12 = sshll.u32 %s4513_s28, 4  ;;  %s3493_s12 = int_to_ptr.vmem [resolvable:$true] %s3492_s12 }
  0x2f   :  { %3949 = vmatprep.subr.bf16.mxu1 %v4511_v8  ;;  %v3502_v50 = vld [vmem:[%s5381_s3] ss:$0 sm:$0xff]  ;;  %v4379_v61 = vld [vmem:[%s5383_s5 + $0x28] sm:$0xff]   ;;  %v4380_v62 = vld [vmem:[%s5383_s5 + $0x30] sm:$0xff]   ;;  %s4484_s3 = scalar_lea.vmem %s3493_s12, 128  ;;  %p4489_p1 = scmp.lt.s32.totalorder %s3493_s12, %s3493_s12 }
  0x30   :  { %v3503_v52 = vld [vmem:[%s5382_s4] ss:$0 sm:$0xff]  ;;  %v4381_v63 = vld [vmem:[%s5383_s5 + $0x38] sm:$0xff]   ;;  %v4383_v1 = vld [vmem:[%s5383_s5 + $0x48] sm:$0xff]   ;;  %s5403_s4 = sld [smem:[#allocation7_spill]]  ;;  %p4485_p0 = scmp.ne.s32.totalorder %s3493_s12, %s4484_s3 }
  0x31   :  { %v4375_v56 = vld [vmem:[%s5383_s5 + $0xa0] sm:$0xff]   ;;  %v4384_v2 = vld [vmem:[%s5383_s5 + $0x50] sm:$0xff]   ;;  %v4385_v3 = vld [vmem:[%s5383_s5 + $0x58] sm:$0xff]   ;;  %p4490_p2 = scmp.lt.s32.totalorder %s4484_s3, %s4484_s3 }
  0x32   :  { %3950 = vmatpush3.bf16.msra.mxu1 %v4372_v44  ;;  %v4378_v60 = vld [vmem:[%s5383_s5 + $0x20] sm:$0xff]   ;;  %v4387_v5 = vld [vmem:[%s5383_s5 + $0x68] sm:$0xff]   ;;  %v4388_v6 = vld [vmem:[%s5383_s5 + $0x70] sm:$0xff]  }
  0x33   :  { %3955 = vmatprep.subr.bf16.mxu1 %v4511_v8  ;;  %v4382_v0 = vld [vmem:[%s5383_s5 + $0x40] sm:$0xff]   ;;  %v4389_v7 = vld [vmem:[%s5383_s5 + $0x78] sm:$0xff]   ;;  %v4390_v9 = vld [vmem:[%s5383_s5 + $0x90] sm:$0xff]   ;;  %p4491_p3 = por %p4490_p2, %p4489_p1 }
  0x34   :  { %v4386_v4 = vld [vmem:[%s5383_s5 + $0x60] sm:$0xff]   ;;  %v4391_v10 = vld [vmem:[%s5383_s5 + $0x98] sm:$0xff]   ;;  %v4392_v11 = vld [vmem:[%s5383_s5 + $0xb0] sm:$0xff]  }
  0x35   :  { %v4393_v12 = vld [vmem:[%s5383_s5 + $0xb8] sm:$0xff]   ;;  %v3504_v44 = vld [vmem:[%s5384_s6] ss:$0 sm:$0xff]  ;;  %p4492_p4 = pnand %p4491_p3, %p4485_p0 }
  0x8a   :  { %v63_v30 = vpop.permute.xlu0 %62 }
  0x8b   :  { %vm64_vm1 = vcmp.eq.s32.totalorder %v63_v30, %v60_v29 }
  0x8c   :  { %3945 = vmatmul.mubr.msk.f32.vlgmr.msra.gmra.mrb[0].mxu0 %vm64_vm1, %v4512_v31 }
  0x8d   :  { %4015 = vmatprep.mubr.msk.bf16.mxu0 %vm4510_vm0, %v4511_v8  ;;  %4012 = vmatpush3.bf16.msra.mxu0 %v4371_v43 }
  0x8e   :  { %4013 = vmatprep.subr.bf16.mxu0 %v4511_v8 }
  0x91   :  { %4014 = vmatpush3.bf16.msra.mxu0 %v4373_v45 }
  0x92   :  { %4027 = vmatprep.subr.bf16.mxu0 %v4511_v8 }
 0x15f   :  { %v150_v33 = vpop.f32.mrb[0].mxu0 }
 0x160   :  { %v151_v34 = vadd.f32 %v150_v33, %v83_v32  ;;  %v3946_v35 = vpop.f32.mrb[1].mxu0 }
 0x162   :  { %v157_v36 = vsel %vm156_vm2, %v151_v34, 0.0 }
 0x163   :  { %158 = vadd.xlane.f32.xlu0 %v157_v36 }
 0x1f0   :  { %v159_v37 = vpop.xlane.xlu0 %158 }
 0x1f1   :  { %v161_v38 = vmul.f32 0.03125, %v159_v37  ;;  %v3508_v37 = vld [vmem:[%s5384_s6 + $0x4] ss:$0 sm:$0xff] }
 0x1f3   :  { %v162_v39 = vsub.f32 %v151_v34, %v161_v38 }
 0x1f5   :  { %v163_v40 = vmul.f32 %v162_v39, %v162_v39 }
 0x1f7   :  { %v164_v41 = vsel %vm156_vm2, %v163_v40, 0.0 }
 0x1f8   :  { %165 = vadd.xlane.f32.xlu1 %v164_v41 }
 0x285   :  { %v166_v46 = vpop.xlane.xlu1 %165 }
 0x286   :  { %v167_v47 = vmul.f32 0.03125, %v166_v46  ;;  %v3509_v46 = vld [vmem:[%s5384_s6 + $0x5] ss:$0 sm:$0xff] }
 0x288   :  { %v168_v48 = vadd.f32 1e-12, %v167_v47 }
 0x28a   :  { %4438 = vrsqrt.f32 %v168_v48 }
 0x294   :  { %v4439_v49 = vpop.eup %4438 }
 0x295   :  { %v170_v51 = vmul.f32 %v4439_v49, %v162_v39 }
 0x297   :  { %v177_v53 = vmul.f32 %v3502_v50, %v170_v51 }
 0x299   :  { %v4690_v54 = vadd.f32 %v3503_v52, %v177_v53 }
 0x29b   :  { %v4700_v57 = vpack.c.bf16 %v4690_v54, %v4690_v54 }
 0x29d   :  { %3952 = vmatmul.mubr.msk.bf16.vlgmr.msra.gmra.mrb[0].mxu1 %vm156_vm2, %v4700_v57  ;;  %4016 = vmatmul.mubr.msk.bf16.vlgmr.msra.gmra.mrb[4].mxu0 %vm156_vm2, %v4700_v57 }
 0x29e   :  { %3956 = vmatpush3.bf16.msra.mxu1 %v4374_v55  ;;  %4028 = vmatpush3.bf16.msra.mxu0 %v4375_v56  ;;  %v3505_v56 = vld [vmem:[%s5384_s6 + $0x1] ss:$0 sm:$0xff] }
 0x29f   :  { %3957 = vmatprep.subr.bf16.mxu1 %v4511_v8  ;;  %4029 = vmatprep.subr.bf16.mxu0 %v4511_v8 }
 0x2a0   :  { %3959 = vmatprep.mubr.msk.bf16.mxu1 %vm4510_vm0, %v4511_v8  ;;  %4031 = vmatprep.mubr.msk.bf16.mxu0 %vm4510_vm0, %v4511_v8 }
 0x2a2   :  { %3958 = vmatpush3.bf16.msra.mxu1 %v4376_v58  ;;  %4030 = vmatpush3.bf16.msra.mxu0 %v4377_v59  ;;  %v3510_v58 = vld [vmem:[%s5384_s6 + $0x6] ss:$0 sm:$0xff] }
 0x2a3   :  { %3963 = vmatprep.subr.bf16.mxu1 %v4511_v8  ;;  %4043 = vmatprep.subr.bf16.mxu0 %v4511_v8 }
 0x2a5   :  { %3960 = vmatmul.mubr.msk.bf16.vlgmr.msra.gmra.mrb[4].mxu1 %vm156_vm2, %v4700_v57  ;;  %4032 = vmatmul.mubr.msk.bf16.vlgmr.msra.gmra.mrb[8].mxu0 %vm156_vm2, %v4700_v57 }
 0x2a6   :  { %3964 = vmatpush3.bf16.msra.mxu1 %v4378_v60  ;;  %3967 = vmatprep.mubr.msk.bf16.mxu1 %vm4510_vm0, %v4511_v8 }
 0x2a7   :  { %3965 = vmatprep.subr.bf16.mxu1 %v4511_v8  ;;  %4045 = vmatprep.mubr.msk.bf16.mxu0 %vm4510_vm0, %v4511_v8 }
 0x2aa   :  { %3966 = vmatpush3.bf16.msra.mxu1 %v4379_v61 }
 0x2ab   :  { %3971 = vmatprep.subr.bf16.mxu1 %v4511_v8 }
 0x2ad   :  { %3968 = vmatmul.mubr.msk.bf16.vlgmr.msra.gmra.mrb[8].mxu1 %vm156_vm2, %v4700_v57 }
 0x2ae   :  { %3972 = vmatpush3.bf16.msra.mxu1 %v4380_v62  ;;  %3975 = vmatprep.mubr.msk.bf16.mxu1 %vm4510_vm0, %v4511_v8 }
 0x2af   :  { %3973 = vmatprep.subr.bf16.mxu1 %v4511_v8 }
 0x2b2   :  { %3974 = vmatpush3.bf16.msra.mxu1 %v4381_v63  ;;  %v3512_v63 = vld [vmem:[%s5384_s6 + $0x8] ss:$0 sm:$0xff] }
 0x2b3   :  { %3979 = vmatprep.subr.bf16.mxu1 %v4511_v8 }
 0x2b5   :  { %3976 = vmatmul.mubr.msk.bf16.vlgmr.msra.gmra.mrb[12].mxu1 %vm156_vm2, %v4700_v57 }
 0x2b6   :  { %3980 = vmatpush3.bf16.msra.mxu1 %v4382_v0  ;;  %3983 = vmatprep.mubr.msk.bf16.mxu1 %vm4510_vm0, %v4511_v8 }
 0x2b7   :  { %3981 = vmatprep.subr.bf16.mxu1 %v4511_v8 }
 0x2ba   :  { %3982 = vmatpush3.bf16.msra.mxu1 %v4383_v1 }
 0x2bb   :  { %3987 = vmatprep.subr.bf16.mxu1 %v4511_v8 }
 0x2bd   :  { %3984 = vmatmul.mubr.msk.bf16.vlgmr.msra.gmra.mrb[16].mxu1 %vm156_vm2, %v4700_v57 }
 0x2be   :  { %3988 = vmatpush3.bf16.msra.mxu1 %v4384_v2  ;;  %3991 = vmatprep.mubr.msk.bf16.mxu1 %vm4510_vm0, %v4511_v8 }
 0x2bf   :  { %3989 = vmatprep.subr.bf16.mxu1 %v4511_v8 }
 0x2c2   :  { %3990 = vmatpush3.bf16.msra.mxu1 %v4385_v3 }
 0x2c3   :  { %3995 = vmatprep.subr.bf16.mxu1 %v4511_v8 }
 0x2c5   :  { %3992 = vmatmul.mubr.msk.bf16.vlgmr.msra.gmra.mrb[20].mxu1 %vm156_vm2, %v4700_v57 }
 0x2c6   :  { %3996 = vmatpush3.bf16.msra.mxu1 %v4386_v4  ;;  %3999 = vmatprep.mubr.msk.bf16.mxu1 %vm4510_vm0, %v4511_v8  ;;  %v3506_v4 = vld [vmem:[%s5384_s6 + $0x2] ss:$0 sm:$0xff] }
 0x2c7   :  { %3997 = vmatprep.subr.bf16.mxu1 %v4511_v8 }
 0x2ca   :  { %3998 = vmatpush3.bf16.msra.mxu1 %v4387_v5 }
 0x2cb   :  { %4003 = vmatprep.subr.bf16.mxu1 %v4511_v8 }
 0x2cd   :  { %4000 = vmatmul.mubr.msk.bf16.vlgmr.msra.gmra.mrb[24].mxu1 %vm156_vm2, %v4700_v57 }
 0x2ce   :  { %4004 = vmatpush3.bf16.msra.mxu1 %v4388_v6  ;;  %4007 = vmatprep.mubr.msk.bf16.mxu1 %vm4510_vm0, %v4511_v8 }
 0x2cf   :  { %4005 = vmatprep.subr.bf16.mxu1 %v4511_v8 }
 0x2d2   :  { %4006 = vmatpush3.bf16.msra.mxu1 %v4389_v7  ;;  %v3511_v7 = vld [vmem:[%s5384_s6 + $0x7] ss:$0 sm:$0xff] }
 0x2d3   :  { %4019 = vmatprep.subr.bf16.mxu1 %v4511_v8 }
 0x2d5   :  { %4008 = vmatmul.mubr.msk.bf16.vlgmr.msra.gmra.mrb[28].mxu1 %vm156_vm2, %v4700_v57 }
 0x2d6   :  { %4020 = vmatpush3.bf16.msra.mxu1 %v4390_v9  ;;  %4023 = vmatprep.mubr.msk.bf16.mxu1 %vm4510_vm0, %v4511_v8 }
 0x2d7   :  { %4021 = vmatprep.subr.bf16.mxu1 %v4511_v8 }
 0x2da   :  { %4022 = vmatpush3.bf16.msra.mxu1 %v4391_v10 }
 0x2db   :  { %4035 = vmatprep.subr.bf16.mxu1 %v4511_v8 }
 0x2dd   :  { %4024 = vmatmul.mubr.msk.bf16.vlgmr.msra.gmra.mrb[32].mxu1 %vm156_vm2, %v4700_v57 }
 0x2de   :  { %4036 = vmatpush3.bf16.msra.mxu1 %v4392_v11  ;;  %4039 = vmatprep.mubr.msk.bf16.mxu1 %vm4510_vm0, %v4511_v8 }
 0x2df   :  { %4037 = vmatprep.subr.bf16.mxu1 %v4511_v8 }
 0x2e2   :  { %4038 = vmatpush3.bf16.msra.mxu1 %v4393_v12 }
 0x2e3   :  { %4049 = vmatprep.subr.bf16.mxu1 %v4511_v8 }
 0x2e5   :  { %4040 = vmatmul.mubr.msk.bf16.vlgmr.msra.gmra.mrb[36].mxu1 %vm156_vm2, %v4700_v57 }
 0x2e6   :  { %4051 = vmatprep.mubr.msk.bf16.mxu1 %vm4510_vm0, %v4511_v8 }
 0x370   :  { %v367_v13 = vpop.f32.mrb[0].mxu1  ;;  %v783_v14 = vpop.f32.mrb[4].mxu0 }
 0x371   :  { %v3953_v15 = vpop.f32.mrb[1].mxu1  ;;  %v4017_v16 = vpop.f32.mrb[5].mxu0  ;;  %v368_v47 = vadd.f32 %v3504_v44, %v367_v13  ;;  %v784_v5 = vadd.f32 %v3512_v63, %v783_v14 }
 0x372   :  { %v370_v17 = vpop.f32.mrb[2].mxu1  ;;  %v786_v18 = vpop.f32.mrb[6].mxu0 }
 0x373   :  { %v3954_v19 = vpop.f32.mrb[3].mxu1  ;;  %v4018_v20 = vpop.f32.mrb[7].mxu0  ;;  %v945_v52 = vpack.c.bf16 %v368_v47, %v368_v47  ;;  %v953_v11 = vpack.c.bf16 %v784_v5, %v784_v5  ;;  %v3507_v18 = vld [vmem:[%s5384_s6 + $0x3] ss:$0 sm:$0xff] }
 0x375   :  { %v1195_v19 = vsel %vm1193_vm4, %v953_v11, 0 }
 0x378   :  { %v419_v21 = vpop.f32.mrb[4].mxu1  ;;  %v4824_v22 = vpop.f32.mrb[8].mxu0 }
 0x379   :  { %v3961_v23 = vpop.f32.mrb[5].mxu1  ;;  %v4033_v24 = vpop.f32.mrb[9].mxu0  ;;  %v420_v59 = vadd.f32 %v3505_v56, %v419_v21  ;;  %v3513_v21 = vld [vmem:[%s5384_s6 + $0x9] ss:$0 sm:$0xff] }
 0x37a   :  { %v422_v25 = vpop.f32.mrb[6].mxu1  ;;  %v890_v26 = vpop.f32.mrb[10].mxu0 }
 0x37b   :  { %v3962_v27 = vpop.f32.mrb[7].mxu1  ;;  %v4034_v28 = vpop.f32.mrb[11].mxu0  ;;  %v946_v1 = vpack.c.bf16 %v420_v59, %v420_v59 }
 0x380   :  { %v471_v29 = vpop.f32.mrb[8].mxu1 }
 0x381   :  { %v3969_v30 = vpop.f32.mrb[9].mxu1  ;;  %v472_v9 = vadd.f32 %v3506_v4, %v471_v29 }
 0x382   :  { %v474_v31 = vpop.f32.mrb[10].mxu1 }
 0x383   :  { %v3970_v32 = vpop.f32.mrb[11].mxu1  ;;  %v947_v15 = vpack.c.bf16 %v472_v9, %v472_v9 }
 0x388   :  { %v4826_v33 = vpop.f32.mrb[12].mxu1 }
 0x389   :  { %v3977_v34 = vpop.f32.mrb[13].mxu1  ;;  %v524_v23 = vadd.f32 %v3507_v18, %v4826_v33 }
 0x38a   :  { %v526_v35 = vpop.f32.mrb[14].mxu1 }
 0x38b   :  { %v3978_v36 = vpop.f32.mrb[15].mxu1  ;;  %v948_v28 = vpack.c.bf16 %v524_v23, %v524_v23 }
 0x390   :  { %v575_v38 = vpop.f32.mrb[16].mxu1 }
 0x391   :  { %v576_v39 = vadd.f32 %v3508_v37, %v575_v38  ;;  %v3985_v40 = vpop.f32.mrb[17].mxu1 }
 0x392   :  { %v578_v41 = vpop.f32.mrb[18].mxu1 }
 0x393   :  { %v949_v42 = vpack.c.bf16 %v576_v39, %v576_v39  ;;  %v3986_v43 = vpop.f32.mrb[19].mxu1 }
 0x395   :  { %v962_v45 = vsel %vm957_vm3, %v949_v42, 0 }
 0x396   :  { %4044 = vmatpush3.bf16.xpose.msra.mxu0 %v962_v45 }
 0x397   :  { %4055 = vmatprep.subr.bf16.mxu0 %v4511_v8 }
 0x398   :  { %v627_v48 = vpop.f32.mrb[20].mxu1 }
 0x399   :  { %v628_v49 = vadd.f32 %v3509_v46, %v627_v48  ;;  %v3993_v50 = vpop.f32.mrb[21].mxu1 }
 0x39a   :  { %v630_v51 = vpop.f32.mrb[22].mxu1 }
 0x39b   :  { %v950_v53 = vpack.c.bf16 %v628_v49, %v628_v49  ;;  %v3994_v55 = vpop.f32.mrb[23].mxu1 }
 0x39d   :  { %v1008_v57 = vsel %vm957_vm3, %v950_v53, 0  ;;  %4046 = vmatmul.mubr.msk.bf16.vlgmr.msra.gmra.mrb[12].mxu0 %vm957_vm3, %v945_v52 }
 0x39e   :  { %4050 = vmatpush3.bf16.xpose.msra.mxu1 %v1008_v57  ;;  %4057 = vmatprep.mubr.msk.bf16.mxu0 %vm4510_vm0, %v4511_v8 }
 0x39f   :  { %4061 = vmatprep.subr.bf16.mxu1 %v4511_v8 }
 0x3a0   :  { %v679_v60 = vpop.f32.mrb[24].mxu1 }
 0x3a1   :  { %v680_v61 = vadd.f32 %v3510_v58, %v679_v60  ;;  %v4001_v62 = vpop.f32.mrb[25].mxu1 }
 0x3a2   :  { %v682_v0 = vpop.f32.mrb[26].mxu1 }
 0x3a3   :  { %v951_v2 = vpack.c.bf16 %v680_v61, %v680_v61  ;;  %v4002_v3 = vpop.f32.mrb[27].mxu1 }
 0x3a5   :  { %v1054_v6 = vsel %vm957_vm3, %v951_v2, 0  ;;  %4052 = vmatmul.mubr.msk.bf16.vlgmr.msra.gmra.mrb[40].mxu1 %vm957_vm3, %v946_v1 }
 0x3a6   :  { %4056 = vmatpush3.bf16.xpose.msra.mxu0 %v1054_v6  ;;  %4063 = vmatprep.mubr.msk.bf16.mxu1 %vm4510_vm0, %v4511_v8 }
 0x3a7   :  { %4067 = vmatprep.subr.bf16.mxu0 %v4511_v8 }
 0x3a8   :  { %v731_v10 = vpop.f32.mrb[28].mxu1 }
 0x3a9   :  { %v732_v12 = vadd.f32 %v3511_v7, %v731_v10  ;;  %v4009_v13 = vpop.f32.mrb[29].mxu1 }
 0x3aa   :  { %v734_v14 = vpop.f32.mrb[30].mxu1 }
 0x3ab   :  { %v952_v16 = vpack.c.bf16 %v732_v12, %v732_v12  ;;  %v4010_v17 = vpop.f32.mrb[31].mxu1 }
 0x3ad   :  { %v1100_v20 = vsel %vm957_vm3, %v952_v16, 0  ;;  %4058 = vmatmul.mubr.msk.bf16.vlgmr.msra.gmra.mrb[16].mxu0 %vm957_vm3, %v947_v15  ;;  %v3514_v15 = vld [vmem:[%s5384_s6 + $0xa] ss:$0 sm:$0xff] }
 0x3ae   :  { %4062 = vmatpush3.bf16.xpose.msra.mxu1 %v1100_v20  ;;  %4068 = vmatpush3.bf16.msra.mxu0 %v1195_v19  ;;  %v888_v16 = vadd.f32 %v3514_v15, %v4824_v22 }
 0x3af   :  { %4073 = vmatprep.subr.bf16.mxu1 %v4511_v8  ;;  %4069 = vmatprep.mubr.msk.bf16.mxu0 %vm4510_vm0, %v4511_v8 }
 0x3b0   :  { %v835_v24 = vpop.f32.mrb[32].mxu1  ;;  %4079 = vmatprep.subr.bf16.mxu0 %v4511_v8  ;;  %v955_v19 = vpack.c.bf16 %v888_v16, %v888_v16 }
 0x3b1   :  { %v836_v25 = vadd.f32 %v3513_v21, %v835_v24  ;;  %v4025_v26 = vpop.f32.mrb[33].mxu1  ;;  %v3515_v21 = vld [vmem:[%s5384_s6 + $0xb] ss:$0 sm:$0xff] }
 0x3b2   :  { %v838_v27 = vpop.f32.mrb[34].mxu1  ;;  %v1287_v24 = vsel %vm1193_vm4, %v955_v19, 0 }
 0x3b3   :  { %v954_v29 = vpack.c.bf16 %v836_v25, %v836_v25  ;;  %v4026_v30 = vpop.f32.mrb[35].mxu1 }
 0x3b5   :  { %v1241_v31 = vsel %vm1193_vm4, %v954_v29, 0  ;;  %4064 = vmatmul.mubr.msk.bf16.vlgmr.msra.gmra.mrb[44].mxu1 %vm957_vm3, %v948_v28 }
 0x3b6   :  { %4074 = vmatpush3.bf16.msra.mxu1 %v1241_v31  ;;  %4075 = vmatprep.mubr.msk.bf16.mxu1 %vm4510_vm0, %v4511_v8 }
 0x3b7   :  { %4085 = vmatprep.subr.bf16.mxu1 %v4511_v8 }
 0x3b8   :  { %v4883_v32 = vpop.f32.mrb[36].mxu1 }
 0x3b9   :  { %v4041_v33 = vpop.f32.mrb[37].mxu1  ;;  %v940_v25 = vadd.f32 %v3515_v21, %v4883_v32 }
 0x3ba   :  { %v942_v34 = vpop.f32.mrb[38].mxu1 }
 0x3bb   :  { %v4042_v35 = vpop.f32.mrb[39].mxu1  ;;  %v956_v27 = vpack.c.bf16 %v940_v25, %v940_v25 }
 0x3bd   :  { %v1333_v30 = vsel %vm1193_vm4, %v956_v27, 0 }
 0x470   :  { %v998_v36 = vpop.f32.mrb[12].mxu0 }
 0x471   :  { %v4047_v37 = vpop.f32.mrb[13].mxu0  ;;  %v1142_v38 = vsel %vm957_vm3, %v998_v36, -inf }
 0x472   :  { %1143 = vmax.xlane.f32.xlu1 %v1142_v38  ;;  %v1001_v39 = vpop.f32.mrb[14].mxu0  ;;  %v1379_v38 = vld [vmem:[%s5385_s7] sm:$0xf] }
 0x473   :  { %v4048_v40 = vpop.f32.mrb[15].mxu0  ;;  %v1387_v39 = vsel %vm1193_vm4, %v1379_v38, 0 }
 0x474   :  { %v1380_v40 = vld [vmem:[%s5385_s7 + $0x4] sm:$0xf] }
 0x478   :  { %v1044_v41 = vpop.f32.mrb[40].mxu1 }
 0x479   :  { %v4053_v42 = vpop.f32.mrb[41].mxu1  ;;  %v1145_v43 = vsel %vm957_vm3, %v1044_v41, -inf }
 0x47a   :  { %v1047_v44 = vpop.f32.mrb[42].mxu1  ;;  %1146 = vmax.xlane.f32.xlu1 %v1145_v43  ;;  %v1381_v42 = vld [vmem:[%s5385_s7 + $0x8] sm:$0xf] }
 0x47b   :  { %v4054_v45 = vpop.f32.mrb[43].mxu1 }
 0x480   :  { %v1090_v46 = vpop.f32.mrb[16].mxu0 }
 0x481   :  { %v4059_v47 = vpop.f32.mrb[17].mxu0  ;;  %v1148_v48 = vsel %vm957_vm3, %v1090_v46, -inf }
 0x482   :  { %1149 = vmax.xlane.f32.xlu1 %v1148_v48  ;;  %v1093_v49 = vpop.f32.mrb[18].mxu0 }
 0x483   :  { %v4060_v50 = vpop.f32.mrb[19].mxu0  ;;  %v1382_v49 = vld [vmem:[%s5385_s7 + $0xc] sm:$0xf] }
 0x488   :  { %v1136_v51 = vpop.f32.mrb[44].mxu1 }
 0x489   :  { %v4065_v52 = vpop.f32.mrb[45].mxu1  ;;  %v1151_v53 = vsel %vm957_vm3, %v1136_v51, -inf }
 0x48a   :  { %v1139_v55 = vpop.f32.mrb[46].mxu1  ;;  %1152 = vmax.xlane.f32.xlu1 %v1151_v53  ;;  %v1525_v53 = vsel %vm1193_vm4, %v1382_v49, 0  ;;  %v4398_v49 = vld [vmem:[%s5391_s13 + $0x10] sm:$0xff]  }
 0x48b   :  { %v4066_v56 = vpop.f32.mrb[47].mxu1 }
 0x4ff   :  { %v1144_v57 = vpop.xlane.xlu1 %1143 }
 0x500   :  { %v1154_v58 = vsub.f32 %v998_v36, %v1144_v57 }
 0x502   :  { %v1158_v59 = vmul.f32 1.442695, %v1154_v58 }
 0x504   :  { %4440 = vpow2.f32 %v1158_v59 }
 0x507   :  { %v1147_v60 = vpop.xlane.xlu1 %1146 }
 0x508   :  { %v1155_v61 = vsub.f32 %v1044_v41, %v1147_v60  ;;  %v1433_v41 = vsel %vm1193_vm4, %v1380_v40, 0 }
 0x50a   :  { %v1160_v62 = vmul.f32 1.442695, %v1155_v61 }
 0x50c   :  { %4442 = vpow2.f32 %v1160_v62 }
 0x50e   :  { %v4441_v63 = vpop.eup %4440 }
 0x50f   :  { %v1150_v0 = vpop.xlane.xlu1 %1149  ;;  %v1166_v1 = vsel %vm957_vm3, %v4441_v63, 0.0 }
 0x510   :  { %v1156_v2 = vsub.f32 %v1090_v46, %v1150_v0  ;;  %1167 = vadd.xlane.f32.xlu1 %v1166_v1  ;;  %v1479_v46 = vsel %vm1193_vm4, %v1381_v42, 0  ;;  %v3565_v42 = vld [vmem:[%s5387_s9] ss:$0 sm:$0xff] }
 0x512   :  { %v1162_v3 = vmul.f32 1.442695, %v1156_v2 }
 0x514   :  { %4444 = vpow2.f32 %v1162_v3 }
 0x516   :  { %v4443_v4 = vpop.eup %4442 }
 0x517   :  { %v1153_v5 = vpop.xlane.xlu1 %1152  ;;  %v1169_v6 = vsel %vm957_vm3, %v4443_v4, 0.0 }
 0x518   :  { %v1157_v7 = vsub.f32 %v1136_v51, %v1153_v5  ;;  %1170 = vadd.xlane.f32.xlu1 %v1169_v6 }
 0x51a   :  { %v1164_v9 = vmul.f32 1.442695, %v1157_v7 }
 0x51c   :  { %4446 = vpow2.f32 %v1164_v9 }
 0x51e   :  { %v4445_v10 = vpop.eup %4444 }
 0x51f   :  { %v1172_v11 = vsel %vm957_vm3, %v4445_v10, 0.0 }
 0x520   :  { %1173 = vadd.xlane.f32.xlu1 %v1172_v11 }
 0x526   :  { %v4447_v12 = vpop.eup %4446 }
 0x527   :  { %v1175_v13 = vsel %vm957_vm3, %v4447_v12, 0.0 }
 0x528   :  { %1176 = vadd.xlane.f32.xlu1 %v1175_v13 }
 0x59d   :  { %v1168_v14 = vpop.xlane.xlu1 %1167 }
 0x59e   :  { %4448 = vrcp.f32 %v1168_v14 }
 0x5a5   :  { %v1171_v17 = vpop.xlane.xlu1 %1170 }
 0x5a6   :  { %4450 = vrcp.f32 %v1171_v17 }
 0x5a8   :  { %v4449_v18 = vpop.eup %4448 }
 0x5a9   :  { %v1182_v20 = vmul.f32 %v4449_v18, %v4441_v63 }
 0x5ab   :  { %v1186_v23 = vpack.c.bf16 %v1182_v20, %v1182_v20 }
 0x5ad   :  { %4070 = vmatmul.mubr.msk.bf16.vlgmr.msra.gmra.mrb[20].mxu0 %vm957_vm3, %v1186_v23  ;;  %v1174_v26 = vpop.xlane.xlu1 %1173 }
 0x5ae   :  { %4080 = vmatpush3.bf16.msra.mxu0 %v1287_v24  ;;  %4452 = vrcp.f32 %v1174_v26  ;;  %4081 = vmatprep.mubr.msk.bf16.mxu0 %vm4510_vm0, %v4511_v8  ;;  %v3564_v24 = vld [vmem:[%s5386_s8] ss:$0 sm:$0xff] }
 0x5af   :  { %4091 = vmatprep.subr.bf16.mxu0 %v4511_v8 }
 0x5b0   :  { %v4451_v22 = vpop.eup %4450 }
 0x5b1   :  { %v1183_v28 = vmul.f32 %v4451_v22, %v4443_v4 }
 0x5b3   :  { %v1187_v29 = vpack.c.bf16 %v1183_v28, %v1183_v28 }
 0x5b5   :  { %4076 = vmatmul.mubr.msk.bf16.vlgmr.msra.gmra.mrb[48].mxu1 %vm957_vm3, %v1187_v29  ;;  %v1177_v31 = vpop.xlane.xlu1 %1176 }
 0x5b6   :  { %4086 = vmatpush3.bf16.msra.mxu1 %v1333_v30  ;;  %4454 = vrcp.f32 %v1177_v31  ;;  %4087 = vmatprep.mubr.msk.bf16.mxu1 %vm4510_vm0, %v4511_v8 }
 0x5b7   :  { %4097 = vmatprep.subr.bf16.mxu1 %v4511_v8 }
 0x5b8   :  { %v4453_v32 = vpop.eup %4452 }
 0x5b9   :  { %v1184_v33 = vmul.f32 %v4453_v32, %v4445_v10 }
 0x5bb   :  { %v1188_v34 = vpack.c.bf16 %v1184_v33, %v1184_v33 }
 0x5bd   :  { %4082 = vmatmul.mubr.msk.bf16.vlgmr.msra.gmra.mrb[24].mxu0 %vm957_vm3, %v1188_v34 }
 0x5be   :  { %4093 = vmatprep.mubr.msk.bf16.mxu0 %vm4510_vm0, %v4511_v8  ;;  %4092 = vmatpush3.bf16.msra.mxu0 %v1387_v39 }
 0x5bf   :  { %4103 = vmatprep.subr.bf16.mxu0 %v4511_v8 }
 0x5c0   :  { %v4455_v35 = vpop.eup %4454 }
 0x5c1   :  { %v1185_v36 = vmul.f32 %v4455_v35, %v4447_v12 }
 0x5c3   :  { %v1189_v37 = vpack.c.bf16 %v1185_v36, %v1185_v36  ;;  %v4394_v36 = vld [vmem:[%s5389_s11] sm:$0xff]  }
 0x5c5   :  { %4088 = vmatmul.mubr.msk.bf16.vlgmr.msra.gmra.mrb[52].mxu1 %vm957_vm3, %v1189_v37  ;;  %v4395_v37 = vld [vmem:[%s5389_s11 + $0x8] sm:$0xff]  }
 0x5c6   :  { %4099 = vmatprep.mubr.msk.bf16.mxu1 %vm4510_vm0, %v4511_v8  ;;  %4098 = vmatpush3.bf16.msra.mxu1 %v1433_v41 }
 0x5c7   :  { %4109 = vmatprep.subr.bf16.mxu1 %v4511_v8 }
 0x680   :  { %v1231_v43 = vpop.f32.mrb[20].mxu0 }
 0x681   :  { %v1375_v44 = vpack.c.bf16 %v1231_v43, %v1231_v43  ;;  %v4071_v45 = vpop.f32.mrb[21].mxu0 }
 0x682   :  { %v1234_v47 = vpop.f32.mrb[22].mxu0 }
 0x683   :  { %v4072_v48 = vpop.f32.mrb[23].mxu0  ;;  %4094 = vmatmul.mubr.msk.bf16.vlgmr.msra.gmra.mrb[28].mxu0 %vm957_vm3, %v1375_v44  ;;  %v3566_v44 = vld [vmem:[%s5388_s10] ss:$0 sm:$0xff] }
 0x684   :  { %4104 = vmatpush3.bf16.msra.mxu0 %v1479_v46  ;;  %4105 = vmatprep.mubr.msk.bf16.mxu0 %vm4510_vm0, %v4511_v8  ;;  %v4397_v48 = vld [vmem:[%s5391_s13 + $0x8] sm:$0xff]  }
 0x685   :  { %4115 = vmatprep.subr.bf16.mxu0 %v4511_v8 }
 0x688   :  { %v1277_v50 = vpop.f32.mrb[48].mxu1 }
 0x689   :  { %v1376_v51 = vpack.c.bf16 %v1277_v50, %v1277_v50  ;;  %v4077_v52 = vpop.f32.mrb[49].mxu1  ;;  %v4399_v50 = vld [vmem:[%s5391_s13 + $0x18] sm:$0xff]  }
 0x68a   :  { %v1280_v55 = vpop.f32.mrb[50].mxu1  ;;  %v4401_v52 = vld [vmem:[%s5391_s13 + $0x28] sm:$0xff]  }
 0x68b   :  { %v4078_v56 = vpop.f32.mrb[51].mxu1  ;;  %4100 = vmatmul.mubr.msk.bf16.vlgmr.msra.gmra.mrb[56].mxu1 %vm957_vm3, %v1376_v51  ;;  %v4400_v51 = vld [vmem:[%s5391_s13 + $0x20] sm:$0xff]   ;;  %v4403_v55 = vld [vmem:[%s5391_s13 + $0x38] sm:$0xff]  }
 0x68c   :  { %4110 = vmatpush3.bf16.msra.mxu1 %v1525_v53  ;;  %4111 = vmatprep.mubr.msk.bf16.mxu1 %vm4510_vm0, %v4511_v8  ;;  %v4402_v53 = vld [vmem:[%s5391_s13 + $0x30] sm:$0xff]   ;;  %v3567_v56 = vld [vmem:[%s5403_s4] ss:$0 sm:$0xff] }
 0x68d   :  { %4123 = vmatprep.subr.bf16.mxu1 %v4511_v8 }
 0x690   :  { %v1323_v57 = vpop.f32.mrb[24].mxu0 }
 0x691   :  { %v1377_v58 = vpack.c.bf16 %v1323_v57, %v1323_v57  ;;  %v4083_v59 = vpop.f32.mrb[25].mxu0 }
 0x692   :  { %v1326_v60 = vpop.f32.mrb[26].mxu0 }
 0x693   :  { %v4084_v61 = vpop.f32.mrb[27].mxu0  ;;  %4106 = vmatmul.mubr.msk.bf16.vlgmr.msra.gmra.mrb[32].mxu0 %vm957_vm3, %v1377_v58 }
 0x694   :  { %4119 = vmatprep.mubr.msk.bf16.mxu0 %vm4510_vm0, %v4511_v8  ;;  %4116 = vmatpush3.bf16.msra.mxu0 %v4394_v36  ;;  %v4409_v36 = vld [vmem:[%s5383_s5 + $0x120] sm:$0xff]  }
 0x695   :  { %4117 = vmatprep.subr.bf16.mxu0 %v4511_v8 }
 0x698   :  { %v1369_v62 = vpop.f32.mrb[52].mxu1  ;;  %4118 = vmatpush3.bf16.msra.mxu0 %v4395_v37 }
 0x699   :  { %v1378_v63 = vpack.c.bf16 %v1369_v62, %v1369_v62  ;;  %v4089_v0 = vpop.f32.mrb[53].mxu1  ;;  %4143 = vmatprep.subr.bf16.mxu0 %v4511_v8 }
 0x69a   :  { %v1372_v1 = vpop.f32.mrb[54].mxu1 }
 0x69b   :  { %v4090_v2 = vpop.f32.mrb[55].mxu1  ;;  %4112 = vmatmul.mubr.msk.bf16.vlgmr.msra.gmra.mrb[60].mxu1 %vm957_vm3, %v1378_v63 }
 0x69c   :  { %4139 = vmatprep.mubr.msk.bf16.mxu1 %vm4510_vm0, %v4511_v8 }
 0x756   :  { %v1423_v3 = vpop.f32.mrb[28].mxu0 }
 0x757   :  { %v4095_v4 = vpop.f32.mrb[29].mxu0  ;;  %v1567_v9 = vsel %vm156_vm2, %v1423_v3, 0.0 }
 0x758   :  { %v1426_v5 = vpop.f32.mrb[30].mxu0 }
 0x759   :  { %v4096_v6 = vpop.f32.mrb[31].mxu0 }
 0x75e   :  { %v1469_v7 = vpop.f32.mrb[56].mxu1 }
 0x75f   :  { %v1568_v10 = vsel %vm156_vm2, %v1469_v7, 0.0  ;;  %v4101_v11 = vpop.f32.mrb[57].mxu1 }
 0x760   :  { %v1569_v12 = vadd.f32 %v1568_v10, %v1567_v9  ;;  %v1472_v13 = vpop.f32.mrb[58].mxu1  ;;  %v3571_v9 = vld [vmem:[%s5392_s14] ss:$0 sm:$0xff] }
 0x761   :  { %v4102_v14 = vpop.f32.mrb[59].mxu1 }
 0x766   :  { %v1515_v15 = vpop.f32.mrb[32].mxu0 }
 0x767   :  { %v1570_v16 = vsel %vm156_vm2, %v1515_v15, 0.0  ;;  %v4107_v17 = vpop.f32.mrb[33].mxu0 }
 0x768   :  { %v1571_v18 = vadd.f32 %v1570_v16, %v1569_v12  ;;  %v1518_v19 = vpop.f32.mrb[34].mxu0 }
 0x769   :  { %v4108_v20 = vpop.f32.mrb[35].mxu0 }
 0x76e   :  { %v1561_v21 = vpop.f32.mrb[60].mxu1 }
 0x76f   :  { %v1572_v23 = vsel %vm156_vm2, %v1561_v21, 0.0  ;;  %v4113_v25 = vpop.f32.mrb[61].mxu1 }
 0x770   :  { %v1573_v26 = vadd.f32 %v1572_v23, %v1571_v18  ;;  %v1564_v22 = vpop.f32.mrb[62].mxu1  ;;  %v4404_v23 = vld [vmem:[%s5383_s5 + $0xc0] sm:$0xff]   ;;  %v4406_v25 = vld [vmem:[%s5383_s5 + $0xc8] sm:$0xff]  }
 0x771   :  { %v4114_v27 = vpop.f32.mrb[63].mxu1 }
 0x772   :  { %v1581_v28 = vadd.f32 %v3564_v24, %v1573_v26  ;;  %v4405_v24 = vld [vmem:[%s5383_s5 + $0x100] sm:$0xff]   ;;  %v4407_v26 = vld [vmem:[%s5383_s5 + $0x108] sm:$0xff]  }
 0x774   :  { %v1582_v29 = vadd.f32 %v1581_v28, %v4690_v54  ;;  %v4396_v54 = vld [vmem:[%s5391_s13] sm:$0xff]  }
 0x775   :  { %4124 = vmatpush3.bf16.msra.mxu1 %v4396_v54  ;;  %v4410_v54 = vld [vmem:[%s5383_s5 + $0xd8] sm:$0xff]  }
 0x776   :  { %v1585_v30 = vsel %vm156_vm2, %v1582_v29, 0.0  ;;  %4125 = vmatprep.subr.bf16.mxu1 %v4511_v8 }
 0x777   :  { %1586 = vadd.xlane.f32.xlu0 %v1585_v30  ;;  %v3580_v30 = vld [vmem:[%s5393_s15] ss:$0 sm:$0xff] }
 0x779   :  { %4126 = vmatpush3.bf16.msra.mxu1 %v4397_v48  ;;  %v4421_v48 = vld [vmem:[%s5383_s5 + $0x118] sm:$0xff]  }
 0x77a   :  { %4127 = vmatprep.subr.bf16.mxu1 %v4511_v8 }
 0x77d   :  { %4128 = vmatpush3.bf16.msra.mxu1 %v4398_v49  ;;  %v4422_v49 = vld [vmem:[%s5383_s5 + $0x130] sm:$0xff]  }
 0x77e   :  { %4129 = vmatprep.subr.bf16.mxu1 %v4511_v8 }
 0x781   :  { %4130 = vmatpush3.bf16.msra.mxu1 %v4399_v50  ;;  %v4423_v50 = vld [vmem:[%s5383_s5 + $0x138] sm:$0xff]  }
 0x782   :  { %4131 = vmatprep.subr.bf16.mxu1 %v4511_v8 }
 0x785   :  { %4132 = vmatpush3.bf16.msra.mxu1 %v4400_v51  ;;  %v4424_v51 = vld [vmem:[%s5383_s5 + $0x150] sm:$0xff]  }
 0x786   :  { %4133 = vmatprep.subr.bf16.mxu1 %v4511_v8 }
 0x789   :  { %4134 = vmatpush3.bf16.msra.mxu1 %v4401_v52  ;;  %v4425_v52 = vld [vmem:[%s5383_s5 + $0x158] sm:$0xff]  }
 0x78a   :  { %4135 = vmatprep.subr.bf16.mxu1 %v4511_v8 }
 0x78d   :  { %4136 = vmatpush3.bf16.msra.mxu1 %v4402_v53  ;;  %v4426_v53 = vld [vmem:[%s5383_s5 + $0x170] sm:$0xff]  }
 0x78e   :  { %4137 = vmatprep.subr.bf16.mxu1 %v4511_v8 }
 0x791   :  { %4138 = vmatpush3.bf16.msra.mxu1 %v4403_v55  ;;  %v4427_v55 = vld [vmem:[%s5383_s5 + $0x178] sm:$0xff]  }
 0x792   :  { %4175 = vmatprep.subr.bf16.mxu1 %v4511_v8 }
 0x804   :  { %v1587_v31 = vpop.xlane.xlu0 %1586 }
 0x805   :  { %v1588_v32 = vmul.f32 0.03125, %v1587_v31 }
 0x807   :  { %v1589_v33 = vsub.f32 %v1582_v29, %v1588_v32  ;;  %v3581_v32 = vld [vmem:[%s5394_s16] ss:$0 sm:$0xff] }
 0x809   :  { %v1590_v34 = vmul.f32 %v1589_v33, %v1589_v33 }
 0x80b   :  { %v1591_v35 = vsel %vm156_vm2, %v1590_v34, 0.0 }
 0x80c   :  { %1592 = vadd.xlane.f32.xlu1 %v1591_v35  ;;  %v4408_v35 = vld [vmem:[%s5383_s5 + $0xd0] sm:$0xff]  }
 0x899   :  { %v1593_v38 = vpop.xlane.xlu1 %1592 }
 0x89a   :  { %v1594_v39 = vmul.f32 0.03125, %v1593_v38  ;;  %v4411_v38 = vld [vmem:[%s5383_s5 + $0x128] sm:$0xff]  }
 0x89c   :  { %v1595_v40 = vadd.f32 1e-12, %v1594_v39  ;;  %v4412_v39 = vld [vmem:[%s5383_s5 + $0xe0] sm:$0xff]  }
 0x89e   :  { %4456 = vrsqrt.f32 %v1595_v40  ;;  %v4413_v40 = vld [vmem:[%s5383_s5 + $0x140] sm:$0xff]  }
 0x8a8   :  { %v4457_v41 = vpop.eup %4456 }
 0x8a9   :  { %v1597_v43 = vmul.f32 %v4457_v41, %v1589_v33  ;;  %v4414_v41 = vld [vmem:[%s5383_s5 + $0xe8] sm:$0xff]  }
 0x8ab   :  { %v1604_v45 = vmul.f32 %v3565_v42, %v1597_v43  ;;  %v4415_v42 = vld [vmem:[%s5383_s5 + $0x148] sm:$0xff]   ;;  %v4416_v43 = vld [vmem:[%s5383_s5 + $0xf0] sm:$0xff]  }
 0x8ad   :  { %v1611_v46 = vadd.f32 %v3566_v44, %v1604_v45  ;;  %v4417_v44 = vld [vmem:[%s5383_s5 + $0x160] sm:$0xff]   ;;  %v4418_v45 = vld [vmem:[%s5383_s5 + $0xf8] sm:$0xff]  }
 0x8af   :  { %v1612_v47 = vpack.c.bf16 %v1611_v46, %v1611_v46 }
 0x8b1   :  { %4120 = vmatmul.mubr.msk.bf16.vlgmr.msra.gmra.mrb[36].mxu0 %vm156_vm2, %v1612_v47  ;;  %v4420_v47 = vld [vmem:[%s5383_s5 + $0x110] sm:$0xff]  }
 0x8b2   :  { %4147 = vmatprep.mubr.msk.bf16.mxu0 %vm4510_vm0, %v4511_v8  ;;  %4144 = vmatpush3.bf16.msra.mxu0 %v4404_v23 }
 0x8b3   :  { %4145 = vmatprep.subr.bf16.mxu0 %v4511_v8 }
 0x8b6   :  { %4146 = vmatpush3.bf16.msra.mxu0 %v4406_v25 }
 0x8b7   :  { %4151 = vmatprep.subr.bf16.mxu0 %v4511_v8 }
 0x984   :  { %v1673_v57 = vpop.f32.mrb[36].mxu0 }
 0x985   :  { %v1674_v58 = vadd.f32 %v3567_v56, %v1673_v57  ;;  %v4121_v59 = vpop.f32.mrb[37].mxu0  ;;  %v3646_v56 = vld [vmem:[%s5384_s6 + $0x10] ss:$0 sm:$0xff] }
 0x986   :  { %v1676_v60 = vpop.f32.mrb[38].mxu0 }
 0x987   :  { %v1680_v61 = vmul.f32 0.044715, %v1674_v58  ;;  %v4122_v62 = vpop.f32.mrb[39].mxu0  ;;  %v1679_v4 = vmul.f32 0.5, %v1674_v58 }
 0x989   :  { %v1681_v63 = vmul.f32 %v1680_v61, %v1674_v58 }
 0x98b   :  { %v1682_v0 = vmul.f32 %v1681_v63, %v1674_v58 }
 0x98d   :  { %v1683_v1 = vadd.f32 %v1682_v0, %v1674_v58 }
 0x98f   :  { %v1684_v2 = vmul.f32 0.7978846, %v1683_v1 }
 0x991   :  { %4458 = vtanh.f32 %v1684_v2 }
 0x99b   :  { %v4459_v3 = vpop.eup %4458 }
 0x99c   :  { %v1686_v5 = vadd.f32 1.0, %v4459_v3  ;;  %v3642_v3 = vld [vmem:[%s5384_s6 + $0xc] ss:$0 sm:$0xff] }
 0x99e   :  { %v1687_v6 = vmul.f32 %v1686_v5, %v1679_v4  ;;  %v3648_v5 = vld [vmem:[%s5384_s6 + $0x12] ss:$0 sm:$0xff] }
 0x9a0   :  { %v1688_v7 = vpack.c.bf16 %v1687_v6, %v1687_v6 }
 0x9a2   :  { %4140 = vmatmul.mubr.bf16.vlgmr.msra.gmra.mrb[64].mxu1 %v1688_v7 }
 0x9a3   :  { %4179 = vmatprep.mubr.msk.bf16.mxu1 %vm4510_vm0, %v4511_v8  ;;  %4176 = vmatpush3.bf16.msra.mxu1 %v4405_v24 }
 0x9a4   :  { %4177 = vmatprep.subr.bf16.mxu1 %v4511_v8 }
 0x9a7   :  { %4178 = vmatpush3.bf16.msra.mxu1 %v4407_v26 }
 0x9a8   :  { %4191 = vmatprep.subr.bf16.mxu1 %v4511_v8 }
 0xa75   :  { %v1794_v10 = vpop.f32.mrb[64].mxu1 }
 0xa76   :  { %v1795_v11 = vadd.f32 %v3571_v9, %v1794_v10  ;;  %v4141_v12 = vpop.f32.mrb[65].mxu1 }
 0xa77   :  { %v1797_v13 = vpop.f32.mrb[66].mxu1 }
 0xa78   :  { %v4142_v14 = vpop.f32.mrb[67].mxu1  ;;  %v1800_v15 = vadd.f32 %v1795_v11, %v1611_v46  ;;  %v4419_v46 = vld [vmem:[%s5383_s5 + $0x168] sm:$0xff]  }
 0xa7a   :  { %v1803_v16 = vsel %vm156_vm2, %v1800_v15, 0.0 }
 0xa7b   :  { %1804 = vadd.xlane.f32.xlu0 %v1803_v16 }
 0xb08   :  { %v1805_v17 = vpop.xlane.xlu0 %1804 }
 0xb09   :  { %v1806_v18 = vmul.f32 0.03125, %v1805_v17 }
 0xb0b   :  { %v1807_v19 = vsub.f32 %v1800_v15, %v1806_v18 }
 0xb0d   :  { %v1808_v20 = vmul.f32 %v1807_v19, %v1807_v19 }
 0xb0f   :  { %v1809_v21 = vsel %vm156_vm2, %v1808_v20, 0.0  ;;  %v3644_v20 = vld [vmem:[%s5384_s6 + $0xe] ss:$0 sm:$0xff] }
 0xb10   :  { %1810 = vadd.xlane.f32.xlu1 %v1809_v21  ;;  %v3650_v21 = vld [vmem:[%s5384_s6 + $0x14] ss:$0 sm:$0xff] }
 0xb9d   :  { %v1811_v22 = vpop.xlane.xlu1 %1810 }
 0xb9e   :  { %v1812_v27 = vmul.f32 0.03125, %v1811_v22 }
 0xba0   :  { %v1813_v28 = vadd.f32 1e-12, %v1812_v27 }
 0xba2   :  { %4460 = vrsqrt.f32 %v1813_v28 }
 0xbac   :  { %v4461_v29 = vpop.eup %4460 }
 0xbad   :  { %v1815_v31 = vmul.f32 %v4461_v29, %v1807_v19 }
 0xbaf   :  { %v1822_v33 = vmul.f32 %v3580_v30, %v1815_v31 }
 0xbb1   :  { %v5040_v34 = vadd.f32 %v3581_v32, %v1822_v33 }
 0xbb3   :  { %v5050_v37 = vpack.c.bf16 %v5040_v34, %v5040_v34 }
 0xbb5   :  { %4148 = vmatmul.mubr.msk.bf16.vlgmr.msra.gmra.mrb[40].mxu0 %vm156_vm2, %v5050_v37  ;;  %4180 = vmatmul.mubr.msk.bf16.vlgmr.msra.gmra.mrb[68].mxu1 %vm156_vm2, %v5050_v37 }
 0xbb6   :  { %4152 = vmatpush3.bf16.msra.mxu0 %v4408_v35  ;;  %4192 = vmatpush3.bf16.msra.mxu1 %v4409_v36 }
 0xbb7   :  { %4153 = vmatprep.subr.bf16.mxu0 %v4511_v8  ;;  %4193 = vmatprep.subr.bf16.mxu1 %v4511_v8 }
 0xbb8   :  { %4155 = vmatprep.mubr.msk.bf16.mxu0 %vm4510_vm0, %v4511_v8  ;;  %4195 = vmatprep.mubr.msk.bf16.mxu1 %vm4510_vm0, %v4511_v8 }
 0xbba   :  { %4154 = vmatpush3.bf16.msra.mxu0 %v4410_v54  ;;  %4194 = vmatpush3.bf16.msra.mxu1 %v4411_v38 }
 0xbbb   :  { %4159 = vmatprep.subr.bf16.mxu0 %v4511_v8  ;;  %4207 = vmatprep.subr.bf16.mxu1 %v4511_v8 }
 0xbbd   :  { %4156 = vmatmul.mubr.msk.bf16.vlgmr.msra.gmra.mrb[44].mxu0 %vm156_vm2, %v5050_v37  ;;  %4196 = vmatmul.mubr.msk.bf16.vlgmr.msra.gmra.mrb[72].mxu1 %vm156_vm2, %v5050_v37 }
 0xbbe   :  { %4160 = vmatpush3.bf16.msra.mxu0 %v4412_v39  ;;  %4208 = vmatpush3.bf16.msra.mxu1 %v4413_v40 }
 0xbbf   :  { %4161 = vmatprep.subr.bf16.mxu0 %v4511_v8  ;;  %4209 = vmatprep.subr.bf16.mxu1 %v4511_v8 }
 0xbc0   :  { %4163 = vmatprep.mubr.msk.bf16.mxu0 %vm4510_vm0, %v4511_v8  ;;  %4211 = vmatprep.mubr.msk.bf16.mxu1 %vm4510_vm0, %v4511_v8 }
 0xbc2   :  { %4162 = vmatpush3.bf16.msra.mxu0 %v4414_v41  ;;  %4210 = vmatpush3.bf16.msra.mxu1 %v4415_v42 }
 0xbc3   :  { %4167 = vmatprep.subr.bf16.mxu0 %v4511_v8  ;;  %4223 = vmatprep.subr.bf16.mxu1 %v4511_v8 }
 0xbc5   :  { %4164 = vmatmul.mubr.msk.bf16.vlgmr.msra.gmra.mrb[48].mxu0 %vm156_vm2, %v5050_v37  ;;  %4212 = vmatmul.mubr.msk.bf16.vlgmr.msra.gmra.mrb[76].mxu1 %vm156_vm2, %v5050_v37 }
 0xbc6   :  { %4168 = vmatpush3.bf16.msra.mxu0 %v4416_v43  ;;  %4224 = vmatpush3.bf16.msra.mxu1 %v4417_v44  ;;  %v3647_v43 = vld [vmem:[%s5384_s6 + $0x11] ss:$0 sm:$0xff] }
 0xbc7   :  { %4169 = vmatprep.subr.bf16.mxu0 %v4511_v8  ;;  %4225 = vmatprep.subr.bf16.mxu1 %v4511_v8 }
 0xbc8   :  { %4171 = vmatprep.mubr.msk.bf16.mxu0 %vm4510_vm0, %v4511_v8  ;;  %4227 = vmatprep.mubr.msk.bf16.mxu1 %vm4510_vm0, %v4511_v8 }
 0xbca   :  { %4170 = vmatpush3.bf16.msra.mxu0 %v4418_v45  ;;  %4226 = vmatpush3.bf16.msra.mxu1 %v4419_v46 }
 0xbcb   :  { %4183 = vmatprep.subr.bf16.mxu0 %v4511_v8  ;;  %4239 = vmatprep.subr.bf16.mxu1 %v4511_v8 }
 0xbcd   :  { %4172 = vmatmul.mubr.msk.bf16.vlgmr.msra.gmra.mrb[52].mxu0 %vm156_vm2, %v5050_v37  ;;  %4228 = vmatmul.mubr.msk.bf16.vlgmr.msra.gmra.mrb[80].mxu1 %vm156_vm2, %v5050_v37 }
 0xbce   :  { %4184 = vmatpush3.bf16.msra.mxu0 %v4420_v47  ;;  %4187 = vmatprep.mubr.msk.bf16.mxu0 %vm4510_vm0, %v4511_v8 }
 0xbcf   :  { %4185 = vmatprep.subr.bf16.mxu0 %v4511_v8  ;;  %4241 = vmatprep.mubr.msk.bf16.mxu1 %vm4510_vm0, %v4511_v8 }
 0xbd2   :  { %4186 = vmatpush3.bf16.msra.mxu0 %v4421_v48 }
 0xbd3   :  { %4199 = vmatprep.subr.bf16.mxu0 %v4511_v8 }
 0xbd5   :  { %4188 = vmatmul.mubr.msk.bf16.vlgmr.msra.gmra.mrb[56].mxu0 %vm156_vm2, %v5050_v37 }
 0xbd6   :  { %4200 = vmatpush3.bf16.msra.mxu0 %v4422_v49  ;;  %4203 = vmatprep.mubr.msk.bf16.mxu0 %vm4510_vm0, %v4511_v8 }
 0xbd7   :  { %4201 = vmatprep.subr.bf16.mxu0 %v4511_v8 }
 0xbda   :  { %4202 = vmatpush3.bf16.msra.mxu0 %v4423_v50  ;;  %v3643_v50 = vld [vmem:[%s5384_s6 + $0xd] ss:$0 sm:$0xff] }
 0xbdb   :  { %4215 = vmatprep.subr.bf16.mxu0 %v4511_v8 }
 0xbdd   :  { %4204 = vmatmul.mubr.msk.bf16.vlgmr.msra.gmra.mrb[60].mxu0 %vm156_vm2, %v5050_v37 }
 0xbde   :  { %4216 = vmatpush3.bf16.msra.mxu0 %v4424_v51  ;;  %4219 = vmatprep.mubr.msk.bf16.mxu0 %vm4510_vm0, %v4511_v8 }
 0xbdf   :  { %4217 = vmatprep.subr.bf16.mxu0 %v4511_v8 }
 0xbe2   :  { %4218 = vmatpush3.bf16.msra.mxu0 %v4425_v52  ;;  %v3649_v52 = vld [vmem:[%s5384_s6 + $0x13] ss:$0 sm:$0xff] }
 0xbe3   :  { %4231 = vmatprep.subr.bf16.mxu0 %v4511_v8 }
 0xbe5   :  { %4220 = vmatmul.mubr.msk.bf16.vlgmr.msra.gmra.mrb[64].mxu0 %vm156_vm2, %v5050_v37 }
 0xbe6   :  { %4232 = vmatpush3.bf16.msra.mxu0 %v4426_v53  ;;  %4235 = vmatprep.mubr.msk.bf16.mxu0 %vm4510_vm0, %v4511_v8 }
 0xbe7   :  { %4233 = vmatprep.subr.bf16.mxu0 %v4511_v8 }
 0xbea   :  { %4234 = vmatpush3.bf16.msra.mxu0 %v4427_v55 }
 0xbeb   :  { %4245 = vmatprep.subr.bf16.mxu0 %v4511_v8 }
 0xbed   :  { %4236 = vmatmul.mubr.msk.bf16.vlgmr.msra.gmra.mrb[68].mxu0 %vm156_vm2, %v5050_v37 }
 0xbee   :  { %4247 = vmatprep.mubr.msk.bf16.mxu0 %vm4510_vm0, %v4511_v8 }
 0xc88   :  { %v2014_v57 = vpop.f32.mrb[40].mxu0  ;;  %v2222_v58 = vpop.f32.mrb[68].mxu1 }
 0xc89   :  { %v2223_v59 = vadd.f32 %v3646_v56, %v2222_v58  ;;  %v4149_v60 = vpop.f32.mrb[41].mxu0  ;;  %v4181_v61 = vpop.f32.mrb[69].mxu1  ;;  %v2015_v6 = vadd.f32 %v3642_v3, %v2014_v57 }
 0xc8a   :  { %v2017_v62 = vpop.f32.mrb[42].mxu0  ;;  %v2225_v63 = vpop.f32.mrb[70].mxu1 }
 0xc8b   :  { %v2596_v0 = vpack.c.bf16 %v2223_v59, %v2223_v59  ;;  %v4150_v1 = vpop.f32.mrb[43].mxu0  ;;  %v4182_v2 = vpop.f32.mrb[71].mxu1  ;;  %v2592_v15 = vpack.c.bf16 %v2015_v6, %v2015_v6  ;;  %v3645_v62 = vld [vmem:[%s5384_s6 + $0xf] ss:$0 sm:$0xff] }
 0xc8d   :  { %v2608_v4 = vsel %vm957_vm3, %v2596_v0, 0  ;;  %v3651_v0 = vld [vmem:[%s5384_s6 + $0x15] ss:$0 sm:$0xff] }
 0xc8e   :  { %4240 = vmatpush3.bf16.xpose.msra.mxu1 %v2608_v4 }
 0xc8f   :  { %4251 = vmatprep.subr.bf16.mxu1 %v4511_v8 }
 0xc90   :  { %v2066_v7 = vpop.f32.mrb[44].mxu0  ;;  %v2326_v9 = vpop.f32.mrb[72].mxu1 }
 0xc91   :  { %v2327_v10 = vadd.f32 %v3648_v5, %v2326_v9  ;;  %v4157_v11 = vpop.f32.mrb[45].mxu0  ;;  %v4197_v12 = vpop.f32.mrb[73].mxu1  ;;  %v2067_v53 = vadd.f32 %v3643_v50, %v2066_v7 }
 0xc92   :  { %v2069_v13 = vpop.f32.mrb[46].mxu0  ;;  %v2329_v14 = vpop.f32.mrb[74].mxu1 }
 0xc93   :  { %v2598_v16 = vpack.c.bf16 %v2327_v10, %v2327_v10  ;;  %v4158_v17 = vpop.f32.mrb[47].mxu0  ;;  %v4198_v18 = vpop.f32.mrb[75].mxu1  ;;  %v2593_v59 = vpack.c.bf16 %v2067_v53, %v2067_v53 }
 0xc95   :  { %v2700_v19 = vsel %vm957_vm3, %v2598_v16, 0  ;;  %4242 = vmatmul.mubr.msk.bf16.vlgmr.msra.gmra.mrb[84].mxu1 %vm957_vm3, %v2592_v15 }
 0xc96   :  { %4252 = vmatpush3.bf16.xpose.msra.mxu1 %v2700_v19  ;;  %4253 = vmatprep.mubr.msk.bf16.mxu1 %vm4510_vm0, %v4511_v8 }
 0xc97   :  { %4263 = vmatprep.subr.bf16.mxu1 %v4511_v8 }
 0xc98   :  { %v2118_v23 = vpop.f32.mrb[48].mxu0  ;;  %v2430_v24 = vpop.f32.mrb[76].mxu1 }
 0xc99   :  { %v2119_v25 = vadd.f32 %v3644_v20, %v2118_v23  ;;  %v2431_v26 = vadd.f32 %v3650_v21, %v2430_v24  ;;  %v4165_v22 = vpop.f32.mrb[49].mxu0  ;;  %v4213_v27 = vpop.f32.mrb[77].mxu1 }
 0xc9a   :  { %v2121_v28 = vpop.f32.mrb[50].mxu0  ;;  %v2433_v29 = vpop.f32.mrb[78].mxu1 }
 0xc9b   :  { %v2594_v30 = vpack.c.bf16 %v2119_v25, %v2119_v25  ;;  %v2600_v31 = vpack.c.bf16 %v2431_v26, %v2431_v26  ;;  %v4166_v32 = vpop.f32.mrb[51].mxu0  ;;  %v4214_v33 = vpop.f32.mrb[79].mxu1 }
 0xc9d   :  { %v2840_v35 = vsel %vm1193_vm4, %v2600_v31, 0  ;;  %4254 = vmatmul.mubr.msk.bf16.vlgmr.msra.gmra.mrb[88].mxu1 %vm957_vm3, %v2594_v30 }
 0xc9e   :  { %4264 = vmatpush3.bf16.msra.mxu1 %v2840_v35  ;;  %4265 = vmatprep.mubr.msk.bf16.mxu1 %vm4510_vm0, %v4511_v8 }
 0xc9f   :  { %4275 = vmatprep.subr.bf16.mxu1 %v4511_v8 }
 0xca0   :  { %v2170_v36 = vpop.f32.mrb[52].mxu0  ;;  %v5201_v37 = vpop.f32.mrb[80].mxu1 }
 0xca1   :  { %v4173_v54 = vpop.f32.mrb[53].mxu0  ;;  %v4229_v38 = vpop.f32.mrb[81].mxu1  ;;  %v2171_v1 = vadd.f32 %v3645_v62, %v2170_v36 }
 0xca2   :  { %v2173_v39 = vpop.f32.mrb[54].mxu0  ;;  %v2537_v40 = vpop.f32.mrb[82].mxu1 }
 0xca3   :  { %v4174_v41 = vpop.f32.mrb[55].mxu0  ;;  %v4230_v42 = vpop.f32.mrb[83].mxu1  ;;  %v2595_v6 = vpack.c.bf16 %v2171_v1, %v2171_v1 }
 0xca8   :  { %v2274_v44 = vpop.f32.mrb[56].mxu0 }
 0xca9   :  { %v2275_v45 = vadd.f32 %v3647_v43, %v2274_v44  ;;  %v4189_v46 = vpop.f32.mrb[57].mxu0 }
 0xcaa   :  { %v2277_v47 = vpop.f32.mrb[58].mxu0 }
 0xcab   :  { %v2597_v48 = vpack.c.bf16 %v2275_v45, %v2275_v45  ;;  %v4190_v49 = vpop.f32.mrb[59].mxu0 }
 0xcad   :  { %v2654_v51 = vsel %vm957_vm3, %v2597_v48, 0 }
 0xcae   :  { %4246 = vmatpush3.bf16.xpose.msra.mxu0 %v2654_v51 }
 0xcaf   :  { %4257 = vmatprep.subr.bf16.mxu0 %v4511_v8 }
 0xcb0   :  { %v2378_v55 = vpop.f32.mrb[60].mxu0 }
 0xcb1   :  { %v2379_v56 = vadd.f32 %v3649_v52, %v2378_v55  ;;  %v4205_v57 = vpop.f32.mrb[61].mxu0 }
 0xcb2   :  { %v2381_v58 = vpop.f32.mrb[62].mxu0 }
 0xcb3   :  { %v2599_v60 = vpack.c.bf16 %v2379_v56, %v2379_v56  ;;  %v4206_v61 = vpop.f32.mrb[63].mxu0  ;;  %v3652_v58 = vld [vmem:[%s5384_s6 + $0x16] ss:$0 sm:$0xff] }
 0xcb5   :  { %v2746_v63 = vsel %vm957_vm3, %v2599_v60, 0  ;;  %4248 = vmatmul.mubr.msk.bf16.vlgmr.msra.gmra.mrb[72].mxu0 %vm957_vm3, %v2593_v59  ;;  %v2535_v59 = vadd.f32 %v3652_v58, %v5201_v37 }
 0xcb6   :  { %4258 = vmatpush3.bf16.xpose.msra.mxu0 %v2746_v63  ;;  %4259 = vmatprep.mubr.msk.bf16.mxu0 %vm4510_vm0, %v4511_v8 }
 0xcb7   :  { %4269 = vmatprep.subr.bf16.mxu0 %v4511_v8  ;;  %v2602_v62 = vpack.c.bf16 %v2535_v59, %v2535_v59 }
 0xcb8   :  { %v2482_v2 = vpop.f32.mrb[64].mxu0 }
 0xcb9   :  { %v2483_v3 = vadd.f32 %v3651_v0, %v2482_v2  ;;  %v4221_v4 = vpop.f32.mrb[65].mxu0  ;;  %v2932_v1 = vsel %vm1193_vm4, %v2602_v62, 0 }
 0xcba   :  { %v2485_v5 = vpop.f32.mrb[66].mxu0 }
 0xcbb   :  { %v2601_v7 = vpack.c.bf16 %v2483_v3, %v2483_v3  ;;  %v4222_v9 = vpop.f32.mrb[67].mxu0  ;;  %v3653_v5 = vld [vmem:[%s5384_s6 + $0x17] ss:$0 sm:$0xff] }
 0xcbd   :  { %v2886_v10 = vsel %vm1193_vm4, %v2601_v7, 0  ;;  %4260 = vmatmul.mubr.msk.bf16.vlgmr.msra.gmra.mrb[76].mxu0 %vm957_vm3, %v2595_v6 }
 0xcbe   :  { %4270 = vmatpush3.bf16.msra.mxu0 %v2886_v10  ;;  %4271 = vmatprep.mubr.msk.bf16.mxu0 %vm4510_vm0, %v4511_v8 }
 0xcbf   :  { %4281 = vmatprep.subr.bf16.mxu0 %v4511_v8 }
 0xcc0   :  { %v5230_v11 = vpop.f32.mrb[68].mxu0 }
 0xcc1   :  { %v4237_v12 = vpop.f32.mrb[69].mxu0  ;;  %v2587_v6 = vadd.f32 %v3653_v5, %v5230_v11  ;;  %v3698_v11 = vld [vmem:[%s5385_s7 + $0x10] sm:$0xf] }
 0xcc2   :  { %v2589_v13 = vpop.f32.mrb[70].mxu0 }
 0xcc3   :  { %v4238_v14 = vpop.f32.mrb[71].mxu0  ;;  %v2603_v10 = vpack.c.bf16 %v2587_v6, %v2587_v6 }
 0xcc5   :  { %v2978_v14 = vsel %vm1193_vm4, %v2603_v10, 0 }
 0xd68   :  { %v2644_v15 = vpop.f32.mrb[84].mxu1 }
 0xd69   :  { %v4243_v16 = vpop.f32.mrb[85].mxu1  ;;  %v2788_v17 = vsel %vm957_vm3, %v2644_v15, -inf }
 0xd6a   :  { %2789 = vmax.xlane.f32.xlu0 %v2788_v17  ;;  %v2647_v18 = vpop.f32.mrb[86].mxu1 }
 0xd6b   :  { %v4244_v19 = vpop.f32.mrb[87].mxu1  ;;  %v3033_v18 = vsel %vm1193_vm4, %v3698_v11, 0 }
 0xd6c   :  { %v3699_v19 = vld [vmem:[%s5385_s7 + $0x14] sm:$0xf] }
 0xd70   :  { %v2736_v20 = vpop.f32.mrb[88].mxu1 }
 0xd71   :  { %v4255_v21 = vpop.f32.mrb[89].mxu1  ;;  %v2794_v23 = vsel %vm957_vm3, %v2736_v20, -inf }
 0xd72   :  { %2795 = vmax.xlane.f32.xlu0 %v2794_v23  ;;  %v2739_v24 = vpop.f32.mrb[90].mxu1  ;;  %v3700_v21 = vld [vmem:[%s5385_s7 + $0x18] sm:$0xf] }
 0xd73   :  { %v4256_v25 = vpop.f32.mrb[91].mxu1 }
 0xd88   :  { %v2690_v26 = vpop.f32.mrb[72].mxu0 }
 0xd89   :  { %v4249_v22 = vpop.f32.mrb[73].mxu0  ;;  %v2791_v27 = vsel %vm957_vm3, %v2690_v26, -inf }
 0xd8a   :  { %2792 = vmax.xlane.f32.xlu1 %v2791_v27  ;;  %v2693_v28 = vpop.f32.mrb[74].mxu0 }
 0xd8b   :  { %v4250_v29 = vpop.f32.mrb[75].mxu0 }
 0xd90   :  { %v2782_v30 = vpop.f32.mrb[76].mxu0 }
 0xd91   :  { %v4261_v31 = vpop.f32.mrb[77].mxu0  ;;  %v2797_v32 = vsel %vm957_vm3, %v2782_v30, -inf }
 0xd92   :  { %2798 = vmax.xlane.f32.xlu1 %v2797_v32  ;;  %v2785_v33 = vpop.f32.mrb[78].mxu0 }
 0xd93   :  { %v4262_v35 = vpop.f32.mrb[79].mxu0  ;;  %v3701_v33 = vld [vmem:[%s5385_s7 + $0x1c] sm:$0xf] }
 0xdf7   :  { %v2790_v36 = vpop.xlane.xlu0 %2789 }
 0xdf8   :  { %v2800_v54 = vsub.f32 %v2644_v15, %v2790_v36 }
 0xdfa   :  { %v2804_v38 = vmul.f32 1.442695, %v2800_v54 }
 0xdfc   :  { %4462 = vpow2.f32 %v2804_v38  ;;  %v3171_v38 = vsel %vm1193_vm4, %v3701_v33, 0  ;;  %v4437_v33 = vld [vmem:[%s5391_s13 + $0x78] sm:$0xff]  }
 0xdff   :  { %v2796_v39 = vpop.xlane.xlu0 %2795 }
 0xe00   :  { %v2802_v40 = vsub.f32 %v2736_v20, %v2796_v39  ;;  %v3079_v20 = vsel %vm1193_vm4, %v3699_v19, 0 }
 0xe02   :  { %v2808_v41 = vmul.f32 1.442695, %v2802_v40 }
 0xe04   :  { %4464 = vpow2.f32 %v2808_v41 }
 0xe06   :  { %v4463_v42 = vpop.eup %4462 }
 0xe07   :  { %v2812_v43 = vsel %vm957_vm3, %v4463_v42, 0.0 }
 0xe08   :  { %2813 = vadd.xlane.f32.xlu0 %v2812_v43 }
 0xe0e   :  { %v4465_v44 = vpop.eup %4464 }
 0xe0f   :  { %v2818_v45 = vsel %vm957_vm3, %v4465_v44, 0.0 }
 0xe10   :  { %2819 = vadd.xlane.f32.xlu0 %v2818_v45 }
 0xe17   :  { %v2793_v46 = vpop.xlane.xlu1 %2792 }
 0xe18   :  { %v2801_v47 = vsub.f32 %v2690_v26, %v2793_v46  ;;  %v3125_v26 = vsel %vm1193_vm4, %v3700_v21, 0  ;;  %v3710_v21 = vld [vmem:[%s5387_s9 + $0x1] ss:$0 sm:$0xff] }
 0xe1a   :  { %v2806_v48 = vmul.f32 1.442695, %v2801_v47 }
 0xe1c   :  { %4466 = vpow2.f32 %v2806_v48 }
 0xe1f   :  { %v2799_v49 = vpop.xlane.xlu1 %2798 }
 0xe20   :  { %v2803_v50 = vsub.f32 %v2782_v30, %v2799_v49 }
 0xe22   :  { %v2810_v51 = vmul.f32 1.442695, %v2803_v50 }
 0xe24   :  { %4468 = vpow2.f32 %v2810_v51 }
 0xe26   :  { %v4467_v52 = vpop.eup %4466 }
 0xe27   :  { %v2815_v53 = vsel %vm957_vm3, %v4467_v52, 0.0 }
 0xe28   :  { %2816 = vadd.xlane.f32.xlu1 %v2815_v53 }
 0xe2e   :  { %v4469_v55 = vpop.eup %4468 }
 0xe2f   :  { %v2821_v56 = vsel %vm957_vm3, %v4469_v55, 0.0 }
 0xe30   :  { %2822 = vadd.xlane.f32.xlu1 %v2821_v56 }
 0xe95   :  { %v2814_v57 = vpop.xlane.xlu0 %2813 }
 0xe96   :  { %4470 = vrcp.f32 %v2814_v57 }
 0xe9d   :  { %v2820_v60 = vpop.xlane.xlu0 %2819 }
 0xe9e   :  { %4472 = vrcp.f32 %v2820_v60 }
 0xea0   :  { %v4471_v61 = vpop.eup %4470 }
 0xea1   :  { %v2828_v63 = vmul.f32 %v4471_v61, %v4463_v42 }
 0xea3   :  { %v2832_v0 = vpack.c.bf16 %v2828_v63, %v2828_v63 }
 0xea5   :  { %4266 = vmatmul.mubr.msk.bf16.vlgmr.msra.gmra.mrb[92].mxu1 %vm957_vm3, %v2832_v0 }
 0xea6   :  { %4276 = vmatpush3.bf16.msra.mxu1 %v2932_v1  ;;  %4277 = vmatprep.mubr.msk.bf16.mxu1 %vm4510_vm0, %v4511_v8 }
 0xea7   :  { %4287 = vmatprep.subr.bf16.mxu1 %v4511_v8 }
 0xea8   :  { %v4473_v2 = vpop.eup %4472 }
 0xea9   :  { %v2830_v3 = vmul.f32 %v4473_v2, %v4465_v44  ;;  %v3707_v2 = vld [vmem:[%s5386_s8 + $0x1] ss:$0 sm:$0xff] }
 0xeab   :  { %v2834_v4 = vpack.c.bf16 %v2830_v3, %v2830_v3 }
 0xead   :  { %4278 = vmatmul.mubr.msk.bf16.vlgmr.msra.gmra.mrb[96].mxu1 %vm957_vm3, %v2834_v4 }
 0xeae   :  { %4289 = vmatprep.mubr.msk.bf16.mxu1 %vm4510_vm0, %v4511_v8  ;;  %4288 = vmatpush3.bf16.msra.mxu1 %v3033_v18 }
 0xeaf   :  { %4299 = vmatprep.subr.bf16.mxu1 %v4511_v8 }
 0xeb5   :  { %v2817_v37 = vpop.xlane.xlu1 %2816 }
 0xeb6   :  { %4474 = vrcp.f32 %v2817_v37 }
 0xebd   :  { %v2823_v7 = vpop.xlane.xlu1 %2822 }
 0xebe   :  { %4476 = vrcp.f32 %v2823_v7 }
 0xec0   :  { %v4475_v9 = vpop.eup %4474 }
 0xec1   :  { %v2829_v12 = vmul.f32 %v4475_v9, %v4467_v52 }
 0xec3   :  { %v2833_v13 = vpack.c.bf16 %v2829_v12, %v2829_v12 }
 0xec5   :  { %4272 = vmatmul.mubr.msk.bf16.vlgmr.msra.gmra.mrb[80].mxu0 %vm957_vm3, %v2833_v13 }
 0xec6   :  { %4282 = vmatpush3.bf16.msra.mxu0 %v2978_v14  ;;  %4283 = vmatprep.mubr.msk.bf16.mxu0 %vm4510_vm0, %v4511_v8 }
 0xec7   :  { %4293 = vmatprep.subr.bf16.mxu0 %v4511_v8 }
 0xec8   :  { %v4477_v15 = vpop.eup %4476 }
 0xec9   :  { %v2831_v16 = vmul.f32 %v4477_v15, %v4469_v55 }
 0xecb   :  { %v2835_v17 = vpack.c.bf16 %v2831_v16, %v2831_v16  ;;  %v4428_v16 = vld [vmem:[%s5389_s11 + $0x10] sm:$0xff]  }
 0xecd   :  { %4284 = vmatmul.mubr.msk.bf16.vlgmr.msra.gmra.mrb[84].mxu0 %vm957_vm3, %v2835_v17  ;;  %v4429_v17 = vld [vmem:[%s5389_s11 + $0x18] sm:$0xff]  }
 0xece   :  { %4295 = vmatprep.mubr.msk.bf16.mxu0 %vm4510_vm0, %v4511_v8  ;;  %4294 = vmatpush3.bf16.msra.mxu0 %v3079_v20 }
 0xecf   :  { %4305 = vmatprep.subr.bf16.mxu0 %v4511_v8 }
 0xf78   :  { %v2876_v23 = vpop.f32.mrb[92].mxu1 }
 0xf79   :  { %v3020_v24 = vpack.c.bf16 %v2876_v23, %v2876_v23  ;;  %v4267_v25 = vpop.f32.mrb[93].mxu1 }
 0xf7a   :  { %v2879_v22 = vpop.f32.mrb[94].mxu1 }
 0xf7b   :  { %v4268_v27 = vpop.f32.mrb[95].mxu1  ;;  %4290 = vmatmul.mubr.msk.bf16.vlgmr.msra.gmra.mrb[100].mxu1 %vm957_vm3, %v3020_v24  ;;  %v3711_v24 = vld [vmem:[%s5388_s10 + $0x1] ss:$0 sm:$0xff] }
 0xf7c   :  { %4300 = vmatpush3.bf16.msra.mxu1 %v3125_v26  ;;  %4301 = vmatprep.mubr.msk.bf16.mxu1 %vm4510_vm0, %v4511_v8  ;;  %v4431_v27 = vld [vmem:[%s5391_s13 + $0x48] sm:$0xff]  }
 0xf7d   :  { %4311 = vmatprep.subr.bf16.mxu1 %v4511_v8 }
 0xf80   :  { %v2968_v28 = vpop.f32.mrb[96].mxu1 }
 0xf81   :  { %v3022_v29 = vpack.c.bf16 %v2968_v28, %v2968_v28  ;;  %v4279_v30 = vpop.f32.mrb[97].mxu1  ;;  %v4432_v28 = vld [vmem:[%s5391_s13 + $0x50] sm:$0xff]  }
 0xf82   :  { %v2971_v31 = vpop.f32.mrb[98].mxu1  ;;  %v4434_v30 = vld [vmem:[%s5391_s13 + $0x60] sm:$0xff]  }
 0xf83   :  { %v4280_v32 = vpop.f32.mrb[99].mxu1  ;;  %4302 = vmatmul.mubr.msk.bf16.vlgmr.msra.gmra.mrb[104].mxu1 %vm957_vm3, %v3022_v29  ;;  %v4433_v29 = vld [vmem:[%s5391_s13 + $0x58] sm:$0xff]   ;;  %v4435_v31 = vld [vmem:[%s5391_s13 + $0x68] sm:$0xff]  }
 0xf84   :  { %4315 = vmatprep.mubr.msk.bf16.mxu1 %vm4510_vm0, %v4511_v8  ;;  %4312 = vmatpush3.bf16.msra.mxu1 %v4428_v16  ;;  %v4436_v32 = vld [vmem:[%s5391_s13 + $0x70] sm:$0xff]  }
 0xf85   :  { %4313 = vmatprep.subr.bf16.mxu1 %v4511_v8 }
 0xf88   :  { %4314 = vmatpush3.bf16.msra.mxu1 %v4429_v17 }
 0xf98   :  { %v2922_v35 = vpop.f32.mrb[80].mxu0 }
 0xf99   :  { %v3021_v36 = vpack.c.bf16 %v2922_v35, %v2922_v35  ;;  %v4273_v54 = vpop.f32.mrb[81].mxu0  ;;  %v3717_v35 = vld [vmem:[%s5403_s4 + $0x1] ss:$0 sm:$0xff] }
 0xf9a   :  { %v2925_v39 = vpop.f32.mrb[82].mxu0 }
 0xf9b   :  { %v4274_v40 = vpop.f32.mrb[83].mxu0  ;;  %4296 = vmatmul.mubr.msk.bf16.vlgmr.msra.gmra.mrb[88].mxu0 %vm957_vm3, %v3021_v36 }
 0xf9c   :  { %4306 = vmatpush3.bf16.msra.mxu0 %v3171_v38  ;;  %4307 = vmatprep.mubr.msk.bf16.mxu0 %vm4510_vm0, %v4511_v8 }
 0xf9d   :  { %4319 = vmatprep.subr.bf16.mxu0 %v4511_v8 }
 0xfa0   :  { %v3014_v41 = vpop.f32.mrb[84].mxu0 }
 0xfa1   :  { %v3023_v42 = vpack.c.bf16 %v3014_v41, %v3014_v41  ;;  %v4285_v43 = vpop.f32.mrb[85].mxu0 }
 0xfa2   :  { %v3017_v44 = vpop.f32.mrb[86].mxu0 }
 0xfa3   :  { %v4286_v45 = vpop.f32.mrb[87].mxu0  ;;  %4308 = vmatmul.mubr.msk.bf16.vlgmr.msra.gmra.mrb[92].mxu0 %vm957_vm3, %v3023_v42 }
 0xfa4   :  { %4335 = vmatprep.mubr.msk.bf16.mxu0 %vm4510_vm0, %v4511_v8 }
0x104e   :  { %v3069_v46 = vpop.f32.mrb[100].mxu1 }
0x104f   :  { %v4291_v47 = vpop.f32.mrb[101].mxu1  ;;  %v3213_v56 = vsel %vm156_vm2, %v3069_v46, 0.0 }
0x1050   :  { %v3072_v48 = vpop.f32.mrb[102].mxu1 }
0x1051   :  { %v4292_v49 = vpop.f32.mrb[103].mxu1 }
0x1056   :  { %v3161_v50 = vpop.f32.mrb[104].mxu1 }
0x1057   :  { %v4303_v51 = vpop.f32.mrb[105].mxu1  ;;  %v3216_v61 = vsel %vm156_vm2, %v3161_v50, 0.0  ;;  %v3738_v50 = vld [vmem:[%s5392_s14 + $0x1] ss:$0 sm:$0xff] }
0x1058   :  { %v3164_v52 = vpop.f32.mrb[106].mxu1 }
0x1059   :  { %v4304_v53 = vpop.f32.mrb[107].mxu1 }
0x106e   :  { %v3115_v55 = vpop.f32.mrb[88].mxu0 }
0x106f   :  { %v3214_v57 = vsel %vm156_vm2, %v3115_v55, 0.0  ;;  %v4297_v58 = vpop.f32.mrb[89].mxu0 }
0x1070   :  { %v3215_v59 = vadd.f32 %v3214_v57, %v3213_v56  ;;  %v3118_v60 = vpop.f32.mrb[90].mxu0 }
0x1071   :  { %v4298_v62 = vpop.f32.mrb[91].mxu0 }
0x1072   :  { %v3217_v63 = vadd.f32 %v3216_v61, %v3215_v59 }
0x1076   :  { %v3207_v0 = vpop.f32.mrb[92].mxu0 }
0x1077   :  { %v3218_v1 = vsel %vm156_vm2, %v3207_v0, 0.0  ;;  %v4309_v3 = vpop.f32.mrb[93].mxu0 }
0x1078   :  { %v3219_v4 = vadd.f32 %v3218_v1, %v3217_v63  ;;  %v3210_v37 = vpop.f32.mrb[94].mxu0 }
0x1079   :  { %v4310_v5 = vpop.f32.mrb[95].mxu0 }
0x107a   :  { %v3228_v6 = vadd.f32 %v3707_v2, %v3219_v4  ;;  %v3749_v4 = vld [vmem:[%s5393_s15 + $0x1] ss:$0 sm:$0xff] }
0x107b   :  { %v3750_v5 = vld [vmem:[%s5394_s16 + $0x1] ss:$0 sm:$0xff] }
0x107c   :  { %v3229_v7 = vadd.f32 %v3228_v6, %v5040_v34  ;;  %v4430_v34 = vld [vmem:[%s5391_s13 + $0x40] sm:$0xff]  }
0x107d   :  { %4320 = vmatpush3.bf16.msra.mxu0 %v4430_v34 }
0x107e   :  { %v3234_v9 = vsel %vm156_vm2, %v3229_v7, 0.0  ;;  %4321 = vmatprep.subr.bf16.mxu0 %v4511_v8 }
0x107f   :  { %3235 = vadd.xlane.f32.xlu0 %v3234_v9 }
0x1081   :  { %4322 = vmatpush3.bf16.msra.mxu0 %v4431_v27 }
0x1082   :  { %4323 = vmatprep.subr.bf16.mxu0 %v4511_v8 }
0x1085   :  { %4324 = vmatpush3.bf16.msra.mxu0 %v4432_v28 }
0x1086   :  { %4325 = vmatprep.subr.bf16.mxu0 %v4511_v8 }
0x1089   :  { %4326 = vmatpush3.bf16.msra.mxu0 %v4433_v29 }
0x108a   :  { %4327 = vmatprep.subr.bf16.mxu0 %v4511_v8 }
0x108d   :  { %4328 = vmatpush3.bf16.msra.mxu0 %v4434_v30 }
0x108e   :  { %4329 = vmatprep.subr.bf16.mxu0 %v4511_v8 }
0x1091   :  { %4330 = vmatpush3.bf16.msra.mxu0 %v4435_v31 }
0x1092   :  { %4331 = vmatprep.subr.bf16.mxu0 %v4511_v8 }
0x1095   :  { %4332 = vmatpush3.bf16.msra.mxu0 %v4436_v32 }
0x1096   :  { %4333 = vmatprep.subr.bf16.mxu0 %v4511_v8 }
0x1099   :  { %4334 = vmatpush3.bf16.msra.mxu0 %v4437_v33 }
0x110c   :  { %v3236_v10 = vpop.xlane.xlu0 %3235 }
0x110d   :  { %v3237_v12 = vmul.f32 0.03125, %v3236_v10 }
0x110f   :  { %v3238_v13 = vsub.f32 %v3229_v7, %v3237_v12 }
0x1111   :  { %v3239_v14 = vmul.f32 %v3238_v13, %v3238_v13 }
0x1113   :  { %v3240_v15 = vsel %vm156_vm2, %v3239_v14, 0.0 }
0x1114   :  { %3241 = vadd.xlane.f32.xlu1 %v3240_v15 }
0x11a1   :  { %v3242_v11 = vpop.xlane.xlu1 %3241 }
0x11a2   :  { %v3243_v18 = vmul.f32 0.03125, %v3242_v11 }
0x11a4   :  { %v3244_v19 = vadd.f32 1e-12, %v3243_v18 }
0x11a6   :  { %4478 = vrsqrt.f32 %v3244_v19 }
0x11b0   :  { %v4479_v20 = vpop.eup %4478 }
0x11b1   :  { %v3246_v23 = vmul.f32 %v4479_v20, %v3238_v13 }
0x11b3   :  { %v3253_v25 = vmul.f32 %v3710_v21, %v3246_v23 }
0x11b5   :  { %v3260_v26 = vadd.f32 %v3711_v24, %v3253_v25 }
0x11b7   :  { %v3261_v22 = vpack.c.bf16 %v3260_v26, %v3260_v26 }
0x11b9   :  { %4316 = vmatmul.mubr.msk.bf16.vlgmr.msra.gmra.mrb[108].mxu1 %vm156_vm2, %v3261_v22 }
0x128c   :  { %v3324_v36 = vpop.f32.mrb[108].mxu1 }
0x128d   :  { %v3325_v54 = vadd.f32 %v3717_v35, %v3324_v36  ;;  %v4317_v38 = vpop.f32.mrb[109].mxu1 }
0x128e   :  { %v3327_v39 = vpop.f32.mrb[110].mxu1 }
0x128f   :  { %v3331_v40 = vmul.f32 0.044715, %v3325_v54  ;;  %v4318_v41 = vpop.f32.mrb[111].mxu1  ;;  %v3330_v47 = vmul.f32 0.5, %v3325_v54 }
0x1291   :  { %v3332_v42 = vmul.f32 %v3331_v40, %v3325_v54 }
0x1293   :  { %v3333_v43 = vmul.f32 %v3332_v42, %v3325_v54 }
0x1295   :  { %v3334_v44 = vadd.f32 %v3333_v43, %v3325_v54 }
0x1297   :  { %v3335_v45 = vmul.f32 0.7978846, %v3334_v44 }
0x1299   :  { %4480 = vtanh.f32 %v3335_v45 }
0x12a3   :  { %v4481_v46 = vpop.eup %4480 }
0x12a4   :  { %v3337_v48 = vadd.f32 1.0, %v4481_v46 }
0x12a6   :  { %v3338_v8 = vmul.f32 %v3337_v48, %v3330_v47 }
0x12a8   :  { %v3339_v49 = vpack.c.bf16 %v3338_v8, %v3338_v8 }
0x12aa   :  { %4336 = vmatmul.mubr.bf16.vlgmr.msra.gmra.mrb[96].mxu0 %v3339_v49 }
0x137d   :  { %v3447_v51 = vpop.f32.mrb[96].mxu0 }
0x137e   :  { %v3448_v52 = vadd.f32 %v3738_v50, %v3447_v51  ;;  %v4337_v53 = vpop.f32.mrb[97].mxu0 }
0x137f   :  { %v3450_v55 = vpop.f32.mrb[98].mxu0 }
0x1380   :  { %v4338_v56 = vpop.f32.mrb[99].mxu0  ;;  %v3453_v57 = vadd.f32 %v3448_v52, %v3260_v26 }
0x1382   :  { %v3458_v58 = vsel %vm156_vm2, %v3453_v57, 0.0 }
0x1383   :  { %3459 = vadd.xlane.f32.xlu0 %v3458_v58 }
0x1410   :  { %v3460_v59 = vpop.xlane.xlu0 %3459 }
0x1411   :  { %v3461_v60 = vmul.f32 0.03125, %v3460_v59 }
0x1413   :  { %v3462_v61 = vsub.f32 %v3453_v57, %v3461_v60 }
0x1415   :  { %v3463_v62 = vmul.f32 %v3462_v61, %v3462_v61 }
0x1417   :  { %v3464_v63 = vsel %vm156_vm2, %v3463_v62, 0.0 }
0x1418   :  { %3465 = vadd.xlane.f32.xlu1 %v3464_v63 }
0x14a5   :  { %v3466_v0 = vpop.xlane.xlu1 %3465 }
0x14a6   :  { %v3467_v1 = vmul.f32 0.03125, %v3466_v0 }
0x14a8   :  { %v3468_v2 = vadd.f32 1e-12, %v3467_v1 }
0x14aa   :  { %4482 = vrsqrt.f32 %v3468_v2 }
0x14b4   :  { %v4483_v3 = vpop.eup %4482 }
0x14b5   :  { %v3470_v37 = vmul.f32 %v4483_v3, %v3462_v61 }
0x14b7   :  { %v3477_v6 = vmul.f32 %v3749_v4, %v3470_v37 }
0x14b9   :  { %v3484_v7 = vadd.f32 %v3750_v5, %v3477_v6 }
0x14bb   :  { %3485 = vst.msk [vmem:[#allocation2] sm:$0xff] %vm156_vm2, %v3484_v7 }
0x14bc   :  { %4495 = shalt.err (!%p4492_p4)
}
0x14bd   :  { %s4496_s11 = scalar_lea.hbm %s5395_s17, 128 }
0x14be   :  { %p4497_p5 = scmp.ne.s32.totalorder %s5395_s17, %s4496_s11  ;;  %p4500_p6 = scmp.lt.u32.totalorder %s4496_s11, %s5395_s17 }
0x14c0   :  { %p4502_p7 = pnand %p4500_p6, %p4497_p5 }
0x14c2   :  { %4505 = shalt.err (!%p4502_p7)
}
0x14c3   :  { %3495 = dma.vmem_to_hbm [thread:$0]  %s3493_s12, 128, %s5395_s17, [#allocation3]  }
0x14c4   :  { %4506 = dma.done.wait [#allocation3], 128  }
0x14c5   :  { %4507 = vsyncadd [#allocation3], 4294967168 }
0x14c6   :  { %3499 = vsyncpa [#allocation3], 1 }

</bundles_post_ra>
